<compile_context>
chip_gen: v6e
topology: v6e:2x2x1
jax: 0.10.0
libtpu: 0.0.40
codegen_flags: <defaults>
</compile_context>

<pallas_src>
import jax
import jax.numpy as jnp
from jax.experimental import pallas as pl
from jax.experimental.pallas import tpu as pltpu

INPUT_DIM = 32 * 32 * 3      # 3072
H1_DIM = 128
H2_DIM = 64
LATENT_DIM = 128
NUM_CLASSES = 6
OUT_PAD = 128                # classifier output padded to a full lane width
DEFAULT_TILE_B = 512         # 6 MiB f32 x tile/step; double-buffered fits all gens


def _round_up(n, m):
    return ((n + m - 1) // m) * m


def _mlp_kernel(x_ref, w1_ref, b1_ref, w2_ref, b2_ref,
                w3_ref, b3_ref, w4_ref, b4_ref,
                out_ref, lat_ref):
    """One batch tile of the fused MLP.

    x arrives as the caller's f32 and is cast to bf16 here (hidden under the DMA).
    Weights/biases are VMEM-resident (constant block index across the grid).
    bf16 operands, f32 accumulation, bf16 writeback.
    """
    x = x_ref[...].astype(jnp.bfloat16)

    # fc1 + relu
    h1 = jnp.dot(x, w1_ref[...], preferred_element_type=jnp.float32) + b1_ref[...]
    h1 = jnp.maximum(h1, 0.0)

    # fc2 + relu
    h2 = jnp.dot(h1.astype(jnp.bfloat16), w2_ref[...],
                 preferred_element_type=jnp.float32) + b2_ref[...]
    h2 = jnp.maximum(h2, 0.0)

    # latent (no activation)
    lat = jnp.dot(h2.astype(jnp.bfloat16), w3_ref[...],
                  preferred_element_type=jnp.float32) + b3_ref[...]

    # classifier (weight columns zero-padded to 128 lanes -> unmasked, lane-dense stores)
    out = jnp.dot(lat.astype(jnp.bfloat16), w4_ref[...],
                  preferred_element_type=jnp.float32) + b4_ref[...]

    lat_ref[...] = lat.astype(lat_ref.dtype)
    out_ref[...] = out.astype(out_ref.dtype)


def simpler_nn_forward(x, params, *, tile_b=DEFAULT_TILE_B, out_dtype=jnp.bfloat16):
    """x: (B, C, H, W) float32 (NCHW, like PyTorch). Returns (out, latent)."""
    B = x.shape[0]
    x_flat = x.reshape(B, -1)                       # == torch x.view(B, -1)
    assert x_flat.shape[1] == INPUT_DIM

    (w1, b1), (w2, b2), (w3, b3), (w4, b4) = params

    # ---- batch tiling: tile_b multiple of 16 (bf16 sublane packing), 512 default ----
    tile_b = min(tile_b, _round_up(B, 16))
    tile_b = max(16, (tile_b // 16) * 16)
    grid = (pl.cdiv(B, tile_b),)                    # partial last block handled by Pallas

    # Pad the 6-wide classifier to 128 lanes (zero columns) -> lane-dense output.
    w4p = jnp.zeros((LATENT_DIM, OUT_PAD), w4.dtype).at[:, :NUM_CLASSES].set(w4)
    b4p = jnp.zeros((1, OUT_PAD), b4.dtype).at[:, :NUM_CLASSES].set(b4)

    # Weights in bf16 (half the HBM footprint, native MXU rate); biases stay f32
    # because they are added to the f32 accumulators.
    w1b, w2b, w3b, w4b = (w.astype(jnp.bfloat16) for w in (w1, w2, w3, w4p))

    resident = lambda arr: pl.BlockSpec(arr.shape, lambda i: (0,) * arr.ndim)

    rows = grid[0] * tile_b
    flops = 2 * rows * (INPUT_DIM * H1_DIM + H1_DIM * H2_DIM
                        + H2_DIM * LATENT_DIM + LATENT_DIM * OUT_PAD)
    out_bytes = jnp.dtype(out_dtype).itemsize
    bytes_accessed = (B * INPUT_DIM * 4                                   # x stream (f32)
                      + sum(w.size * 2 for w in (w1b, w2b, w3b, w4b))     # bf16 weights
                      + sum(b.size * 4 for b in (b1, b2, b3, b4p))        # f32 biases
                      + B * (OUT_PAD + LATENT_DIM) * out_bytes)           # writeback

    out_p, lat_p = pl.pallas_call(
        _mlp_kernel,
        out_shape=(
            jax.ShapeDtypeStruct((B, OUT_PAD), out_dtype),
            jax.ShapeDtypeStruct((B, LATENT_DIM), out_dtype),
        ),
        grid=grid,
        in_specs=[
            pl.BlockSpec((tile_b, INPUT_DIM), lambda i: (i, 0)),   # x: streamed f32
            resident(w1b), resident(b1),
            resident(w2b), resident(b2),
            resident(w3b), resident(b3),
            resident(w4b), resident(b4p),
        ],
        out_specs=(
            pl.BlockSpec((tile_b, OUT_PAD), lambda i: (i, 0)),
            pl.BlockSpec((tile_b, LATENT_DIM), lambda i: (i, 0)),
        ),
        compiler_params=pltpu.CompilerParams(
            dimension_semantics=("parallel",),       # v7x: batch tiles over 2 TCs
            vmem_limit_bytes=32 * 1024 * 1024),      # lift v5e's 16 MiB scoped default
        cost_estimate=pl.CostEstimate(
            flops=flops, transcendentals=0, bytes_accessed=int(bytes_accessed)),
    )(x_flat, w1b, b1, w2b, b2, w3b, b3, w4b, b4p)

    return out_p[:, :NUM_CLASSES], lat_p


def init_params(key):
    """Deterministic init mimicking nn.Linear default (uniform +/- 1/sqrt(fan_in)).
    Weights stored as (in_features, out_features) so the kernel can do x @ W.
    (Real nn.Linear weights are (out, in) and must be transposed when porting.)"""
    dims = [(INPUT_DIM, H1_DIM), (H1_DIM, H2_DIM),
            (H2_DIM, LATENT_DIM), (LATENT_DIM, NUM_CLASSES)]
    params = []
    for (fan_in, fan_out) in dims:
        key, kw, kb = jax.random.split(key, 3)
        bound = 1.0 / (fan_in ** 0.5)
        w = jax.random.uniform(kw, (fan_in, fan_out), jnp.float32, -bound, bound)
        b = jax.random.uniform(kb, (1, fan_out), jnp.float32, -bound, bound)
        params.append((w, b))
    return params


if __name__ == "__main__":
    key = jax.random.PRNGKey(0)
    kx, kp = jax.random.split(key)

    params = init_params(kp)

    def reference(xx):
        xf = xx.reshape(xx.shape[0], -1)
        h = jnp.maximum(xf @ params[0][0] + params[0][1], 0.0)
        h = jnp.maximum(h @ params[1][0] + params[1][1], 0.0)
        lat = h @ params[2][0] + params[2][1]
        out = lat @ params[3][0] + params[3][1]
        return out, lat

    # Small batch, input consistent with input_dim = 32*32*3 (NCHW).
    x = jax.random.normal(kx, (2, 3, 32, 32), dtype=jnp.float32)
    out, latent = simpler_nn_forward(x, params)
    jax.block_until_ready((out, latent))

    out_ref, lat_ref = reference(x)
    assert out.shape == (2, NUM_CLASSES) and latent.shape == (2, LATENT_DIM)
    # bf16 weights/activations/outputs -> loosened tolerance vs the f32 reference.
    assert jnp.allclose(out.astype(jnp.float32), out_ref, atol=3e-2, rtol=3e-2), \
        "classifier mismatch"
    assert jnp.allclose(latent.astype(jnp.float32), lat_ref, atol=3e-2, rtol=3e-2), \
        "latent mismatch"

    # Batch that is not a tile multiple: exercises the cdiv grid / masked last block.
    x2 = jax.random.normal(kx, (20, 3, 32, 32), dtype=jnp.float32)
    out2, lat2 = simpler_nn_forward(x2, params, tile_b=16)
    jax.block_until_ready((out2, lat2))
    out2_ref, lat2_ref = reference(x2)
    assert out2.shape == (20, NUM_CLASSES) and lat2.shape == (20, LATENT_DIM)
    assert jnp.allclose(out2.astype(jnp.float32), out2_ref, atol=3e-2, rtol=3e-2), \
        "tiled classifier mismatch"
    assert jnp.allclose(lat2.astype(jnp.float32), lat2_ref, atol=3e-2, rtol=3e-2), \
        "tiled latent mismatch"

    print("KERNEL_OK")
</pallas_src>

<mosaic_0001>
module attributes {stable_mosaic.version = 11 : i64} {
  func.func @_mlp_kernel(%arg0: i32, %arg1: memref<16x3072xf32, #tpu.memory_space<vmem>>, %arg2: memref<3072x128xbf16, #tpu.memory_space<vmem>>, %arg3: memref<1x128xf32, #tpu.memory_space<vmem>>, %arg4: memref<128x64xbf16, #tpu.memory_space<vmem>>, %arg5: memref<1x64xf32, #tpu.memory_space<vmem>>, %arg6: memref<64x128xbf16, #tpu.memory_space<vmem>>, %arg7: memref<1x128xf32, #tpu.memory_space<vmem>>, %arg8: memref<128x128xbf16, #tpu.memory_space<vmem>>, %arg9: memref<1x128xf32, #tpu.memory_space<vmem>>, %arg10: memref<16x128xbf16, #tpu.memory_space<vmem>>, %arg11: memref<16x128xbf16, #tpu.memory_space<vmem>>) attributes {dimension_semantics = [#tpu.dimension_semantics<parallel>], iteration_bounds = array<i64: 1>, scalar_prefetch = 0 : i64, scratch_operands = 0 : i64, tpu.core_type = #tpu.core_type<tc>, window_params = [{transform_indices = @transform_0, window_bounds = array<i64: 16, 3072>}, {pipeline_mode = #tpu.pipeline_mode<synchronous>, transform_indices = @transform_1, window_bounds = array<i64: 3072, 128>}, {pipeline_mode = #tpu.pipeline_mode<synchronous>, transform_indices = @transform_2, window_bounds = array<i64: 1, 128>}, {pipeline_mode = #tpu.pipeline_mode<synchronous>, transform_indices = @transform_3, window_bounds = array<i64: 128, 64>}, {pipeline_mode = #tpu.pipeline_mode<synchronous>, transform_indices = @transform_4, window_bounds = array<i64: 1, 64>}, {pipeline_mode = #tpu.pipeline_mode<synchronous>, transform_indices = @transform_5, window_bounds = array<i64: 64, 128>}, {pipeline_mode = #tpu.pipeline_mode<synchronous>, transform_indices = @transform_6, window_bounds = array<i64: 1, 128>}, {pipeline_mode = #tpu.pipeline_mode<synchronous>, transform_indices = @transform_7, window_bounds = array<i64: 128, 128>}, {pipeline_mode = #tpu.pipeline_mode<synchronous>, transform_indices = @transform_8, window_bounds = array<i64: 1, 128>}, {transform_indices = @transform_9, window_bounds = array<i64: 16, 128>}, {transform_indices = @transform_10, window_bounds = array<i64: 16, 128>}]} {
    %c0 = arith.constant 0 : index
    %c0_0 = arith.constant 0 : index
    %0 = vector.load %arg1[%c0, %c0_0] : memref<16x3072xf32, #tpu.memory_space<vmem>>, vector<16x3072xf32>
    %1 = arith.truncf %0 : vector<16x3072xf32> to vector<16x3072xbf16>
    %c0_1 = arith.constant 0 : index
    %c0_2 = arith.constant 0 : index
    %2 = vector.load %arg2[%c0_1, %c0_2] : memref<3072x128xbf16, #tpu.memory_space<vmem>>, vector<3072x128xbf16>
    %cst = arith.constant dense<0.000000e+00> : vector<16x128xf32>
    %3 = tpu.matmul %1, %2, %cst {dimension_numbers = #tpu.dot_dimension_numbers<[1], [0], [0], [1], [0, 0, 1, 1], [], []>} : vector<16x3072xbf16>, vector<3072x128xbf16>, vector<16x128xf32> -> vector<16x128xf32>
    %c0_3 = arith.constant 0 : index
    %c0_4 = arith.constant 0 : index
    %4 = vector.load %arg3[%c0_3, %c0_4] : memref<1x128xf32, #tpu.memory_space<vmem>>, vector<1x128xf32>
    %5 = vector.broadcast %4 : vector<1x128xf32> to vector<16x128xf32>
    %6 = arith.addf %3, %5 : vector<16x128xf32>
    %cst_5 = arith.constant 0.000000e+00 : f32
    %7 = vector.broadcast %cst_5 : f32 to vector<16x128xf32>
    %8 = arith.maximumf %6, %7 : vector<16x128xf32>
    %9 = arith.truncf %8 : vector<16x128xf32> to vector<16x128xbf16>
    %c0_6 = arith.constant 0 : index
    %c0_7 = arith.constant 0 : index
    %10 = vector.load %arg4[%c0_6, %c0_7] : memref<128x64xbf16, #tpu.memory_space<vmem>>, vector<128x64xbf16>
    %cst_8 = arith.constant dense<0.000000e+00> : vector<16x64xf32>
    %11 = tpu.matmul %9, %10, %cst_8 {dimension_numbers = #tpu.dot_dimension_numbers<[1], [0], [0], [1], [0, 0, 1, 1], [], []>} : vector<16x128xbf16>, vector<128x64xbf16>, vector<16x64xf32> -> vector<16x64xf32>
    %c0_9 = arith.constant 0 : index
    %c0_10 = arith.constant 0 : index
    %12 = vector.load %arg5[%c0_9, %c0_10] : memref<1x64xf32, #tpu.memory_space<vmem>>, vector<1x64xf32>
    %13 = vector.broadcast %12 : vector<1x64xf32> to vector<16x64xf32>
    %14 = arith.addf %11, %13 : vector<16x64xf32>
    %cst_11 = arith.constant 0.000000e+00 : f32
    %15 = vector.broadcast %cst_11 : f32 to vector<16x64xf32>
    %16 = arith.maximumf %14, %15 : vector<16x64xf32>
    %17 = arith.truncf %16 : vector<16x64xf32> to vector<16x64xbf16>
    %c0_12 = arith.constant 0 : index
    %c0_13 = arith.constant 0 : index
    %18 = vector.load %arg6[%c0_12, %c0_13] : memref<64x128xbf16, #tpu.memory_space<vmem>>, vector<64x128xbf16>
    %cst_14 = arith.constant dense<0.000000e+00> : vector<16x128xf32>
    %19 = tpu.matmul %17, %18, %cst_14 {dimension_numbers = #tpu.dot_dimension_numbers<[1], [0], [0], [1], [0, 0, 1, 1], [], []>} : vector<16x64xbf16>, vector<64x128xbf16>, vector<16x128xf32> -> vector<16x128xf32>
    %c0_15 = arith.constant 0 : index
    %c0_16 = arith.constant 0 : index
    %20 = vector.load %arg7[%c0_15, %c0_16] : memref<1x128xf32, #tpu.memory_space<vmem>>, vector<1x128xf32>
    %21 = vector.broadcast %20 : vector<1x128xf32> to vector<16x128xf32>
    %22 = arith.addf %19, %21 : vector<16x128xf32>
    %23 = arith.truncf %22 : vector<16x128xf32> to vector<16x128xbf16>
    %c0_17 = arith.constant 0 : index
    %c0_18 = arith.constant 0 : index
    %24 = vector.load %arg8[%c0_17, %c0_18] : memref<128x128xbf16, #tpu.memory_space<vmem>>, vector<128x128xbf16>
    %cst_19 = arith.constant dense<0.000000e+00> : vector<16x128xf32>
    %25 = tpu.matmul %23, %24, %cst_19 {dimension_numbers = #tpu.dot_dimension_numbers<[1], [0], [0], [1], [0, 0, 1, 1], [], []>} : vector<16x128xbf16>, vector<128x128xbf16>, vector<16x128xf32> -> vector<16x128xf32>
    %c0_20 = arith.constant 0 : index
    %c0_21 = arith.constant 0 : index
    %26 = vector.load %arg9[%c0_20, %c0_21] : memref<1x128xf32, #tpu.memory_space<vmem>>, vector<1x128xf32>
    %27 = vector.broadcast %26 : vector<1x128xf32> to vector<16x128xf32>
    %28 = arith.addf %25, %27 : vector<16x128xf32>
    %29 = arith.truncf %22 : vector<16x128xf32> to vector<16x128xbf16>
    %c0_22 = arith.constant 0 : index
    %c0_23 = arith.constant 0 : index
    %30 = vector.load %arg11[%c0_22, %c0_23] : memref<16x128xbf16, #tpu.memory_space<vmem>>, vector<16x128xbf16>
    tpu.vector_store %arg11[%c0_22, %c0_23], %29 {strides = array<i32>} : memref<16x128xbf16, #tpu.memory_space<vmem>>, vector<16x128xbf16>,
    %31 = arith.truncf %28 : vector<16x128xf32> to vector<16x128xbf16>
    %c0_24 = arith.constant 0 : index
    %c0_25 = arith.constant 0 : index
    %32 = vector.load %arg10[%c0_24, %c0_25] : memref<16x128xbf16, #tpu.memory_space<vmem>>, vector<16x128xbf16>
    tpu.vector_store %arg10[%c0_24, %c0_25], %31 {strides = array<i32>} : memref<16x128xbf16, #tpu.memory_space<vmem>>, vector<16x128xbf16>,
    return
  }
  func.func @transform_0(%arg0: i32) -> (i32, i32) {
    %c0_i32 = arith.constant 0 : i32
    %c0_i32_0 = arith.constant 0 : i32
    return %arg0, %c0_i32 : i32, i32
  }
  func.func @transform_1(%arg0: i32) -> (i32, i32) {
    %c0_i32 = arith.constant 0 : i32
    %c0_i32_0 = arith.constant 0 : i32
    %c0_i32_1 = arith.constant 0 : i32
    return %c0_i32, %c0_i32_0 : i32, i32
  }
  func.func @transform_2(%arg0: i32) -> (i32, i32) {
    %c0_i32 = arith.constant 0 : i32
    %c0_i32_0 = arith.constant 0 : i32
    %c0_i32_1 = arith.constant 0 : i32
    return %c0_i32, %c0_i32_0 : i32, i32
  }
  func.func @transform_3(%arg0: i32) -> (i32, i32) {
    %c0_i32 = arith.constant 0 : i32
    %c0_i32_0 = arith.constant 0 : i32
    %c0_i32_1 = arith.constant 0 : i32
    return %c0_i32, %c0_i32_0 : i32, i32
  }
  func.func @transform_4(%arg0: i32) -> (i32, i32) {
    %c0_i32 = arith.constant 0 : i32
    %c0_i32_0 = arith.constant 0 : i32
    %c0_i32_1 = arith.constant 0 : i32
    return %c0_i32, %c0_i32_0 : i32, i32
  }
  func.func @transform_5(%arg0: i32) -> (i32, i32) {
    %c0_i32 = arith.constant 0 : i32
    %c0_i32_0 = arith.constant 0 : i32
    %c0_i32_1 = arith.constant 0 : i32
    return %c0_i32, %c0_i32_0 : i32, i32
  }
  func.func @transform_6(%arg0: i32) -> (i32, i32) {
    %c0_i32 = arith.constant 0 : i32
    %c0_i32_0 = arith.constant 0 : i32
    %c0_i32_1 = arith.constant 0 : i32
    return %c0_i32, %c0_i32_0 : i32, i32
  }
  func.func @transform_7(%arg0: i32) -> (i32, i32) {
    %c0_i32 = arith.constant 0 : i32
    %c0_i32_0 = arith.constant 0 : i32
    %c0_i32_1 = arith.constant 0 : i32
    return %c0_i32, %c0_i32_0 : i32, i32
  }
  func.func @transform_8(%arg0: i32) -> (i32, i32) {
    %c0_i32 = arith.constant 0 : i32
    %c0_i32_0 = arith.constant 0 : i32
    %c0_i32_1 = arith.constant 0 : i32
    return %c0_i32, %c0_i32_0 : i32, i32
  }
  func.func @transform_9(%arg0: i32) -> (i32, i32) {
    %c0_i32 = arith.constant 0 : i32
    %c0_i32_0 = arith.constant 0 : i32
    return %arg0, %c0_i32 : i32, i32
  }
  func.func @transform_10(%arg0: i32) -> (i32, i32) {
    %c0_i32 = arith.constant 0 : i32
    %c0_i32_0 = arith.constant 0 : i32
    return %arg0, %c0_i32 : i32, i32
  }
}

</mosaic_0001>

<bundles_post_ra>
// kernel: tpu_custom_call.1
= control target key start
LH: loop header
LB: loop body
LE: loop exit
PB: predicated region body
PF: predicated region fallthrough
CT: control target
= control target key end

     0   :  { %16 = vsyncpa [#allocation3], 0  ;;  %s4367_s0 = inlined_call_operand.hbm [shape: f32[2,3072], index: 0, kind: input, shape index: {}]   ;;  %s4368_s1 = inlined_call_operand.hbm [shape: bf16[3072,128], index: 1, kind: input, shape index: {}]   ;;  %s4369_s2 = inlined_call_operand.vmem [shape: f32[1,128], index: 2, kind: input, shape index: {}]   ;;  %s4370_s3 = inlined_call_operand.vmem [shape: bf16[128,64], index: 3, kind: input, shape index: {}]   ;;  %s4371_s4 = inlined_call_operand.vmem [shape: f32[1,64], index: 4, kind: input, shape index: {}]   ;;  %s4372_s5 = inlined_call_operand.vmem [shape: bf16[64,128], index: 5, kind: input, shape index: {}]   ;;  %s4373_s6 = inlined_call_operand.vmem [shape: f32[1,128], index: 6, kind: input, shape index: {}]   ;;  %s4374_s7 = inlined_call_operand.vmem [shape: bf16[128,128], index: 7, kind: input, shape index: {}]   ;;  %s4375_s8 = inlined_call_operand.vmem [shape: f32[1,128], index: 8, kind: input, shape index: {}]   ;;  %s4376_s9 = inlined_call_operand.hbm [shape: bf16[2,128], index: 9, kind: output, shape index: {0}]   ;;  %s4377_s10 = inlined_call_operand.hbm [shape: bf16[2,128], index: 10, kind: output, shape index: {1}]  }
   0x1   :  { %17 = vsyncpa [#allocation6], 0 }
   0x2   :  { %18 = vsyncpa [#allocation4], 0 }
   0x3   :  { %19 = vsyncpa [#allocation9], 0 }
   0x4   :  { %24 = vsyncadd [#allocation3], 5376  ;;  %s4134_s13 = smov [#allocation2]  }
   0x5   :  { %s25_s14 = sshll.u32 %s4134_s13, 4  ;;  %s26_s14 = int_to_ptr.vmem [resolvable:$true] %s25_s14 }
   0x6   :  { %s4054_s15 = scalar_lea.vmem %s26_s14, 768  ;;  %s4058_s16 = scalar_lea.vmem %s26_s14, 6144 }
   0x7   :  { %p4055_p0 = scmp.ne.s32.totalorder %s26_s14, %s4054_s15  ;;  %p4059_p1 = scmp.lt.s32.totalorder %s26_s14, %s26_s14 }
   0x8   :  { %p4060_p2 = scmp.lt.s32.totalorder %s4058_s16, %s4054_s15 }
   0xa   :  { %p4061_p3 = por %p4060_p2, %p4059_p1 }
   0xc   :  { %p4062_p4 = pnand %p4061_p3, %p4055_p0 }
   0xe   :  { %4065 = shalt.err (!%p4062_p4)
}
   0xf   :  { %s4135_s17 = smov 768   ;;  %s4136_s18 = smov 48  }
  0x10   :  { %31 = dma.hbm_to_vmem [thread:$0]  %s4367_s0, 768, %s26_s14, [#allocation3], %s4135_s17, %s4135_s17, %s4136_s18  }
  0x11   :  { %s4137_s21 = smov [#allocation5]  }
  0x12   :  { %s37_s22 = sshll.u32 %s4137_s21, 4  ;;  %s38_s22 = int_to_ptr.vmem [resolvable:$true] %s37_s22 }
  0x13   :  { %s4074_s23 = scalar_lea.vmem %s38_s22, 24576  ;;  %p4079_p6 = scmp.lt.s32.totalorder %s38_s22, %s38_s22 }
  0x14   :  { %p4075_p5 = scmp.ne.s32.totalorder %s38_s22, %s4074_s23  ;;  %p4080_p7 = scmp.lt.s32.totalorder %s4074_s23, %s4074_s23 }
  0x16   :  { %p4081_p8 = por %p4080_p7, %p4079_p6 }
  0x18   :  { %p4082_p9 = pnand %p4081_p8, %p4075_p5 }
  0x1a   :  { %4085 = shalt.err (!%p4082_p9)
}
  0x1b   :  { %s4138_s24 = smov 64   ;;  %s4139_s25 = smov 4  }
  0x1c   :  { %43 = dma.hbm_to_vmem [thread:$0]  %s4368_s1, 24576, %s38_s22, [#allocation6], %s4138_s24, %s4138_s24, %s4139_s25  }
  0x1d   :  { %4126 = dma.done.wait [#allocation3], 6144  }
  0x1e   :  { %4127 = vsyncadd [#allocation3], 4294961152 }
  0x1f   :  { %4128 = dma.done.wait [#allocation6], 24576  }
  0x20   :  { %4129 = vsyncadd [#allocation6], 4294942720  ;;  %v3762_v0 = vld [vmem:[#allocation5 + $0x78] sm:$0xff]   ;;  %v3766_v4 = vld [vmem:[#allocation5 + $0x70] sm:$0xff]   ;;  %v4140_v25 = vmov 1983009808   ;;  %v168_v27 = vlaneseq }
  0x21   :  { %v3763_v1 = vld [vmem:[#allocation5 + $0xf8] sm:$0xff]   ;;  %3409 = vmatprep.subr.bf16.mxu0 %v3762_v0  ;;  %v3767_v5 = vld [vmem:[#allocation5 + $0xf0] sm:$0xff]   ;;  %v3770_v8 = vld [vmem:[#allocation5 + $0x68] sm:$0xff]   ;;  %v166_v26 = vunpack.c.l.s4 %v4140_v25  ;;  %vm4142_vm0 = vmmov 0   ;;  %vm2857_vm1 = vcmask 523264  }
  0x22   :  { %v3764_v2 = vld [vmem:[#allocation5 + $0x38] sm:$0xff]   ;;  %3431 = vmatprep.subr.bf16.mxu1 %v3763_v1  ;;  %v3768_v6 = vld [vmem:[#allocation5 + $0x30] sm:$0xff]   ;;  %v3771_v9 = vld [vmem:[#allocation5 + $0xe8] sm:$0xff]   ;;  %v4209_v33 = vshrl.u32 %v168_v27, 7 }
  0x23   :  { %v3765_v3 = vld [vmem:[#allocation5 + $0xb8] sm:$0xff]   ;;  %3410 = vmatpush3.bf16.msra.mxu0 %v3764_v2  ;;  %v3769_v7 = vld [vmem:[#allocation5 + $0xb0] sm:$0xff]   ;;  %v3772_v10 = vld [vmem:[#allocation5 + $0x28] sm:$0xff]   ;;  %v167_v32 = vunpack.c.0.s8 %v166_v26 }
  0x24   :  { %3432 = vmatpush3.bf16.msra.mxu1 %v3765_v3  ;;  %3411 = vmatprep.subr.bf16.mxu0 %v3766_v4  ;;  %v3773_v11 = vld [vmem:[#allocation5 + $0xa8] sm:$0xff]   ;;  %v3774_v12 = vld [vmem:[#allocation5 + $0x60] sm:$0xff]   ;;  %v3778_v16 = vld [vmem:[#allocation5 + $0x58] sm:$0xff]  }
  0x25   :  { %3433 = vmatprep.subr.bf16.mxu1 %v3767_v5  ;;  %v3775_v13 = vld [vmem:[#allocation5 + $0xe0] sm:$0xff]   ;;  %v3779_v17 = vld [vmem:[#allocation5 + $0xd8] sm:$0xff]   ;;  %v3782_v20 = vld [vmem:[#allocation5 + $0x50] sm:$0xff]   ;;  %v4212_v37 = vsub.s32 %v167_v32, %v4209_v33 }
  0x26   :  { %v3776_v14 = vld [vmem:[#allocation5 + $0x20] sm:$0xff]   ;;  %v3780_v18 = vld [vmem:[#allocation5 + $0x18] sm:$0xff]   ;;  %v3783_v21 = vld [vmem:[#allocation5 + $0xd0] sm:$0xff]  }
  0x27   :  { %3412 = vmatpush3.bf16.msra.mxu0 %v3768_v6  ;;  %v3777_v15 = vld [vmem:[#allocation5 + $0xa0] sm:$0xff]   ;;  %v3781_v19 = vld [vmem:[#allocation5 + $0x98] sm:$0xff]   ;;  %v3784_v22 = vld [vmem:[#allocation5 + $0x10] sm:$0xff]  }
  0x28   :  { %3434 = vmatpush3.bf16.msra.mxu1 %v3769_v7  ;;  %3413 = vmatprep.subr.bf16.mxu0 %v3770_v8  ;;  %v3785_v23 = vld [vmem:[#allocation5 + $0x90] sm:$0xff]   ;;  %v3786_v24 = vld [vmem:[#allocation5 + $0x48] sm:$0xff]   ;;  %v3790_v31 = vld [vmem:[#allocation5 + $0x40] sm:$0xff]  }
  0x29   :  { %3435 = vmatprep.subr.bf16.mxu1 %v3771_v9  ;;  %v3787_v28 = vld [vmem:[#allocation5 + $0xc8] sm:$0xff]   ;;  %v3791_v34 = vld [vmem:[#allocation5 + $0xc0] sm:$0xff]   ;;  %v3806_v53 = vld [vmem:[#allocation5 + $0x178] sm:$0xff]  }
  0x2a   :  { %v3788_v29 = vld [vmem:[#allocation5 + $0x8] sm:$0xff]   ;;  %v3792_v35 = vld [vmem:[#allocation5] sm:$0xff]   ;;  %v3807_v58 = vld [vmem:[#allocation5 + $0x1f8] sm:$0xff]  }
  0x2b   :  { %3414 = vmatpush3.bf16.msra.mxu0 %v3772_v10  ;;  %v3789_v30 = vld [vmem:[#allocation5 + $0x88] sm:$0xff]   ;;  %v3793_v36 = vld [vmem:[#allocation5 + $0x80] sm:$0xff]   ;;  %v3808_v62 = vld [vmem:[#allocation5 + $0x138] sm:$0xff]  }
  0x2c   :  { %3436 = vmatpush3.bf16.msra.mxu1 %v3773_v11  ;;  %3415 = vmatprep.subr.bf16.mxu0 %v3774_v12  ;;  %v3794_v38 = vld [vmem:[#allocation2] ss:$48 sps:$4 sm:$0xff]   ;;  %v3802_v43 = vld [vmem:[#allocation2 + $0x4] ss:$48 sps:$4 sm:$0xff]   ;;  %v3809_v2 = vld [vmem:[#allocation5 + $0x1b8] sm:$0xff]  }
  0x2d   :  { %3437 = vmatprep.subr.bf16.mxu1 %v3775_v13  ;;  %v3796_v39 = vld [vmem:[#allocation2 + $0x60] ss:$48 sps:$4 sm:$0xff]   ;;  %v171_v42 = vrot.slane %v3794_v38, %v4212_v37  ;;  %v3803_v44 = vld [vmem:[#allocation2 + $0x64] ss:$48 sps:$4 sm:$0xff]   ;;  %v178_v50 = vrot.slane %v3802_v43, %v4212_v37  ;;  %v3814_v10 = vld [vmem:[#allocation5 + $0x168] sm:$0xff]  }
  0x2e   :  { %v3798_v40 = vld [vmem:[#allocation2 + $0xc0] ss:$48 sps:$4 sm:$0xff]   ;;  %v3804_v45 = vld [vmem:[#allocation2 + $0xc4] ss:$48 sps:$4 sm:$0xff]   ;;  %v185_v46 = vrot.slane %v3796_v39, %v4212_v37  ;;  %v192_v51 = vrot.slane %v3803_v44, %v4212_v37  ;;  %v3815_v11 = vld [vmem:[#allocation5 + $0x1e8] sm:$0xff]  }
  0x2f   :  { %3416 = vmatpush3.bf16.msra.mxu0 %v3776_v14  ;;  %v3800_v41 = vld [vmem:[#allocation2 + $0x120] ss:$48 sps:$4 sm:$0xff]   ;;  %v387_v47 = vrot.slane %v3798_v40, %v4212_v37  ;;  %v3805_v49 = vld [vmem:[#allocation2 + $0x124] ss:$48 sps:$4 sm:$0xff]   ;;  %v394_v52 = vrot.slane %v3804_v45, %v4212_v37  ;;  %v3816_v12 = vld [vmem:[#allocation5 + $0x128] sm:$0xff]  }
  0x30   :  { %3438 = vmatpush3.bf16.msra.mxu1 %v3777_v15  ;;  %3417 = vmatprep.subr.bf16.mxu0 %v3778_v16  ;;  %v401_v48 = vrot.slane %v3800_v41, %v4212_v37  ;;  %v194_v54 = vcombine.high %v171_v42, %v185_v46  ;;  %v408_v56 = vrot.slane %v3805_v49, %v4212_v37  ;;  %v3810_v4 = vld [vmem:[#allocation5 + $0x170] sm:$0xff]   ;;  %v3817_v13 = vld [vmem:[#allocation5 + $0x1a8] sm:$0xff]   ;;  %v3818_v14 = vld [vmem:[#allocation5 + $0x160] sm:$0xff]  }
  0x31   :  { %3439 = vmatprep.subr.bf16.mxu1 %v3779_v17  ;;  %v193_v57 = vcombine.low %v171_v42, %v185_v46  ;;  %v196_v59 = vcombine.high %v178_v50, %v192_v51  ;;  %v195_v61 = vcombine.low %v178_v50, %v192_v51  ;;  %v3811_v7 = vld [vmem:[#allocation5 + $0x1f0] sm:$0xff]   ;;  %v3819_v15 = vld [vmem:[#allocation5 + $0x1e0] sm:$0xff]   ;;  %v3830_v26 = vld [vmem:[#allocation5 + $0x148] sm:$0xff]  }
  0x32   :  { %v410_v55 = vcombine.high %v387_v47, %v401_v48  ;;  %v409_v60 = vcombine.low %v387_v47, %v401_v48  ;;  %v412_v0 = vcombine.high %v394_v52, %v408_v56  ;;  %v411_v1 = vcombine.low %v394_v52, %v408_v56  ;;  %v3812_v8 = vld [vmem:[#allocation5 + $0x130] sm:$0xff]   ;;  %v3820_v16 = vld [vmem:[#allocation5 + $0x120] sm:$0xff]   ;;  %v3831_v27 = vld [vmem:[#allocation5 + $0x1c8] sm:$0xff]  }
  0x33   :  { %3418 = vmatpush3.bf16.msra.mxu0 %v3780_v18  ;;  %v3813_v9 = vld [vmem:[#allocation5 + $0x1b0] sm:$0xff]   ;;  %v3821_v17 = vld [vmem:[#allocation5 + $0x1a0] sm:$0xff]   ;;  %v3822_v18 = vld [vmem:[#allocation5 + $0x158] sm:$0xff]  }
  0x34   :  { %3440 = vmatpush3.bf16.msra.mxu1 %v3781_v19  ;;  %3419 = vmatprep.subr.bf16.mxu0 %v3782_v20  ;;  %v642_v63 = vpack.c.bf16 %v410_v55, %v194_v54  ;;  %v641_v3 = vpack.c.bf16 %v409_v60, %v193_v57  ;;  %v644_v5 = vpack.c.bf16 %v412_v0, %v196_v59  ;;  %v3823_v19 = vld [vmem:[#allocation5 + $0x1d8] sm:$0xff]   ;;  %v3829_v25 = vld [vmem:[#allocation5 + $0x190] sm:$0xff]   ;;  %v3836_v32 = vld [vmem:[#allocation5 + $0x100] sm:$0xff]  }
  0x35   :  { %3441 = vmatprep.subr.bf16.mxu1 %v3783_v21  ;;  %v643_v6 = vpack.c.bf16 %v411_v1, %v195_v61  ;;  %v3824_v20 = vld [vmem:[#allocation5 + $0x118] sm:$0xff]  }
  0x36   :  { %2240 = vmatprep.mubr.bf16.mxu0 %v642_v63  ;;  %2281 = vmatprep.mubr.bf16.mxu1 %v644_v5  ;;  %v3825_v21 = vld [vmem:[#allocation5 + $0x198] sm:$0xff]   ;;  %v3855_v5 = vld [vmem:[#allocation5 + $0x2f0] sm:$0xff]  }
  0x37   :  { %3420 = vmatpush3.bf16.msra.mxu0 %v3784_v22  ;;  %v3826_v22 = vld [vmem:[#allocation5 + $0x150] sm:$0xff]   ;;  %v3842_v38 = vld [vmem:[#allocation2 + $0xc8] ss:$48 sps:$4 sm:$0xff]   ;;  %v3846_v40 = vld [vmem:[#allocation2 + $0xc] ss:$48 sps:$4 sm:$0xff]  }
  0x38   :  { %3442 = vmatpush3.bf16.msra.mxu1 %v3785_v23  ;;  %3421 = vmatprep.subr.bf16.mxu0 %v3786_v24  ;;  %v3827_v23 = vld [vmem:[#allocation5 + $0x1d0] sm:$0xff]   ;;  %v3844_v39 = vld [vmem:[#allocation2 + $0x128] ss:$48 sps:$4 sm:$0xff]   ;;  %v3847_v41 = vld [vmem:[#allocation2 + $0x6c] ss:$48 sps:$4 sm:$0xff]   ;;  %v423_v44 = vrot.slane %v3842_v38, %v4212_v37  ;;  %v214_v48 = vrot.slane %v3846_v40, %v4212_v37 }
  0x39   :  { %3443 = vmatprep.subr.bf16.mxu1 %v3787_v28  ;;  %v3828_v24 = vld [vmem:[#allocation5 + $0x110] sm:$0xff]   ;;  %v3832_v28 = vld [vmem:[#allocation5 + $0x108] sm:$0xff]   ;;  %v437_v47 = vrot.slane %v3844_v39, %v4212_v37  ;;  %v228_v49 = vrot.slane %v3847_v41, %v4212_v37  ;;  %v3850_v50 = vld [vmem:[#allocation5 + $0x278] sm:$0xff]  }
  0x3a   :  { %v3848_v45 = vld [vmem:[#allocation2 + $0xcc] ss:$48 sps:$4 sm:$0xff]   ;;  %v3890_v38 = vld [vmem:[#allocation2 + $0x14] ss:$48 sps:$4 sm:$0xff]  }
  0x3b   :  { %3422 = vmatpush3.bf16.msra.mxu0 %v3788_v29  ;;  %v3833_v29 = vld [vmem:[#allocation5 + $0x188] sm:$0xff]   ;;  %v430_v52 = vrot.slane %v3848_v45, %v4212_v37  ;;  %v3851_v55 = vld [vmem:[#allocation5 + $0x2f8] sm:$0xff]   ;;  %v446_v56 = vcombine.high %v423_v44, %v437_v47  ;;  %v232_v57 = vcombine.high %v214_v48, %v228_v49  ;;  %v231_v59 = vcombine.low %v214_v48, %v228_v49  ;;  %v3891_v41 = vld [vmem:[#allocation2 + $0x74] ss:$48 sps:$4 sm:$0xff]  }
  0x3c   :  { %3444 = vmatpush3.bf16.msra.mxu1 %v3789_v30  ;;  %3423 = vmatprep.subr.bf16.mxu0 %v3790_v31  ;;  %v3834_v30 = vld [vmem:[#allocation5 + $0x140] sm:$0xff]   ;;  %v3849_v46 = vld [vmem:[#allocation2 + $0x12c] ss:$48 sps:$4 sm:$0xff]   ;;  %v264_v49 = vrot.slane %v3891_v41, %v4212_v37 }
  0x3d   :  { %3445 = vmatprep.subr.bf16.mxu1 %v3791_v34  ;;  %v3835_v31 = vld [vmem:[#allocation5 + $0x1c0] sm:$0xff]   ;;  %v3852_v60 = vld [vmem:[#allocation5 + $0x238] sm:$0xff]  }
  0x3e   :  { %v3837_v34 = vld [vmem:[#allocation5 + $0x180] sm:$0xff]   ;;  %v3853_v63 = vld [vmem:[#allocation5 + $0x2b8] sm:$0xff]  }
  0x3f   :  { %3424 = vmatpush3.bf16.msra.mxu0 %v3792_v35  ;;  %v3838_v35 = vld [vmem:[#allocation2 + $0x8] ss:$48 sps:$4 sm:$0xff]  }
  0x40   :  { %3446 = vmatpush3.bf16.msra.mxu1 %v3793_v36  ;;  %3453 = vmatprep.subr.bf16.mxu0 %v3806_v53  ;;  %v3840_v36 = vld [vmem:[#allocation2 + $0x68] ss:$48 sps:$4 sm:$0xff]   ;;  %v207_v42 = vrot.slane %v3838_v35, %v4212_v37  ;;  %v444_v53 = vrot.slane %v3849_v46, %v4212_v37  ;;  %v3886_v35 = vld [vmem:[#allocation2 + $0xd0] ss:$48 sps:$4 sm:$0xff]   ;;  %v250_v46 = vrot.slane %v3890_v38, %v4212_v37  ;;  %v3935_v38 = vld [vmem:[#allocation2 + $0x7c] ss:$48 sps:$4 sm:$0xff]  }
  0x41   :  { %3475 = vmatprep.subr.bf16.mxu1 %v3807_v58  ;;  %v221_v43 = vrot.slane %v3840_v36, %v4212_v37  ;;  %v445_v58 = vcombine.low %v423_v44, %v437_v47  ;;  %v3888_v36 = vld [vmem:[#allocation2 + $0x130] ss:$48 sps:$4 sm:$0xff]   ;;  %v459_v44 = vrot.slane %v3886_v35, %v4212_v37  ;;  %v3894_v47 = vld [vmem:[#allocation5 + $0x378] sm:$0xff]  }
  0x42   :  { %2241 = vmatmul.mubr.bf16.vlgmr.msra.gmra.mxu0 %v641_v3  ;;  %v448_v61 = vcombine.high %v430_v52, %v444_v53  ;;  %v473_v45 = vrot.slane %v3888_v36, %v4212_v37  ;;  %v3934_v36 = vld [vmem:[#allocation2 + $0x1c] ss:$48 sps:$4 sm:$0xff]  }
  0x43   :  { %3454 = vmatpush3.bf16.msra.mxu0 %v3808_v62  ;;  %2282 = vmatmul.mubr.bf16.vlgmr.msra.gmra.mxu1 %v643_v6  ;;  %v230_v51 = vcombine.high %v207_v42, %v221_v43  ;;  %v229_v54 = vcombine.low %v207_v42, %v221_v43  ;;  %v447_v62 = vcombine.low %v430_v52, %v444_v53  ;;  %v3856_v6 = vld [vmem:[#allocation5 + $0x230] sm:$0xff]   ;;  %v3895_v52 = vld [vmem:[#allocation5 + $0x3f8] sm:$0xff]  }
  0x44   :  { %3455 = vmatprep.subr.bf16.mxu0 %v3810_v4  ;;  %3476 = vmatpush3.bf16.msra.mxu1 %v3809_v2  ;;  %v3854_v2 = vld [vmem:[#allocation5 + $0x270] sm:$0xff]   ;;  %v648_v3 = vpack.c.bf16 %v448_v61, %v232_v57  ;;  %v482_v53 = vcombine.high %v459_v44, %v473_v45  ;;  %v268_v57 = vcombine.high %v250_v46, %v264_v49  ;;  %v3897_v61 = vld [vmem:[#allocation5 + $0x3b8] sm:$0xff]  }
  0x45   :  { %3477 = vmatprep.subr.bf16.mxu1 %v3811_v7  ;;  %v646_v0 = vpack.c.bf16 %v446_v56, %v230_v51  ;;  %v645_v1 = vpack.c.bf16 %v445_v58, %v229_v54  ;;  %v647_v4 = vpack.c.bf16 %v447_v62, %v231_v59  ;;  %v3857_v7 = vld [vmem:[#allocation5 + $0x2b0] sm:$0xff]   ;;  %v3896_v56 = vld [vmem:[#allocation5 + $0x338] sm:$0xff]   ;;  %v267_v59 = vcombine.low %v250_v46, %v264_v49 }
  0x46   :  { %2363 = vmatprep.mubr.bf16.mxu1 %v648_v3  ;;  %v3892_v42 = vld [vmem:[#allocation2 + $0xd4] ss:$48 sps:$4 sm:$0xff]  }
  0x47   :  { %3456 = vmatpush3.bf16.msra.mxu0 %v3812_v8  ;;  %2322 = vmatprep.mubr.bf16.mxu0 %v646_v0  ;;  %v3858_v8 = vld [vmem:[#allocation5 + $0x268] sm:$0xff]   ;;  %v3893_v43 = vld [vmem:[#allocation2 + $0x134] ss:$48 sps:$4 sm:$0xff]  }
  0x48   :  { %3457 = vmatprep.subr.bf16.mxu0 %v3814_v10  ;;  %3478 = vmatpush3.bf16.msra.mxu1 %v3813_v9  ;;  %v3859_v9 = vld [vmem:[#allocation5 + $0x2e8] sm:$0xff]   ;;  %v480_v51 = vrot.slane %v3893_v43, %v4212_v37  ;;  %v3898_v0 = vld [vmem:[#allocation5 + $0x370] sm:$0xff]  }
  0x49   :  { %3479 = vmatprep.subr.bf16.mxu1 %v3815_v11  ;;  %v3860_v10 = vld [vmem:[#allocation5 + $0x228] sm:$0xff]   ;;  %v3899_v3 = vld [vmem:[#allocation5 + $0x3f0] sm:$0xff]  }
  0x4a   :  { %v3861_v11 = vld [vmem:[#allocation5 + $0x2a8] sm:$0xff]  }
  0x4b   :  { %3458 = vmatpush3.bf16.msra.mxu0 %v3816_v12  ;;  %v3862_v12 = vld [vmem:[#allocation5 + $0x260] sm:$0xff]   ;;  %v3937_v43 = vld [vmem:[#allocation2 + $0x13c] ss:$48 sps:$4 sm:$0xff]  }
  0x4c   :  { %3459 = vmatprep.subr.bf16.mxu0 %v3818_v14  ;;  %3480 = vmatpush3.bf16.msra.mxu1 %v3817_v13  ;;  %v3863_v13 = vld [vmem:[#allocation5 + $0x2e0] sm:$0xff]  }
  0x4d   :  { %3481 = vmatprep.subr.bf16.mxu1 %v3819_v15  ;;  %v3864_v14 = vld [vmem:[#allocation5 + $0x220] sm:$0xff]  }
  0x4e   :  { %v3865_v15 = vld [vmem:[#allocation5 + $0x2a0] sm:$0xff]  }
  0x4f   :  { %3460 = vmatpush3.bf16.msra.mxu0 %v3820_v16  ;;  %v3866_v16 = vld [vmem:[#allocation5 + $0x258] sm:$0xff]  }
  0x50   :  { %3461 = vmatprep.subr.bf16.mxu0 %v3822_v18  ;;  %3482 = vmatpush3.bf16.msra.mxu1 %v3821_v17  ;;  %v3867_v17 = vld [vmem:[#allocation5 + $0x2d8] sm:$0xff]  }
  0x51   :  { %3483 = vmatprep.subr.bf16.mxu1 %v3823_v19  ;;  %v3868_v18 = vld [vmem:[#allocation5 + $0x218] sm:$0xff]  }
  0x52   :  { %v3869_v19 = vld [vmem:[#allocation5 + $0x298] sm:$0xff]  }
  0x53   :  { %3462 = vmatpush3.bf16.msra.mxu0 %v3824_v20  ;;  %v3870_v20 = vld [vmem:[#allocation5 + $0x250] sm:$0xff]  }
  0x54   :  { %3463 = vmatprep.subr.bf16.mxu0 %v3826_v22  ;;  %3484 = vmatpush3.bf16.msra.mxu1 %v3825_v21  ;;  %v3871_v21 = vld [vmem:[#allocation5 + $0x2d0] sm:$0xff]  }
  0x55   :  { %3485 = vmatprep.subr.bf16.mxu1 %v3827_v23  ;;  %v3872_v22 = vld [vmem:[#allocation5 + $0x210] sm:$0xff]  }
  0x56   :  { %v3873_v23 = vld [vmem:[#allocation5 + $0x290] sm:$0xff]  }
  0x57   :  { %3464 = vmatpush3.bf16.msra.mxu0 %v3828_v24  ;;  %v3874_v24 = vld [vmem:[#allocation5 + $0x248] sm:$0xff]  }
  0x58   :  { %3465 = vmatprep.subr.bf16.mxu0 %v3830_v26  ;;  %3486 = vmatpush3.bf16.msra.mxu1 %v3829_v25  ;;  %v3875_v25 = vld [vmem:[#allocation5 + $0x2c8] sm:$0xff]  }
  0x59   :  { %3487 = vmatprep.subr.bf16.mxu1 %v3831_v27  ;;  %v3876_v26 = vld [vmem:[#allocation5 + $0x208] sm:$0xff]  }
  0x5a   :  { %v3877_v27 = vld [vmem:[#allocation5 + $0x288] sm:$0xff]  }
  0x5b   :  { %3466 = vmatpush3.bf16.msra.mxu0 %v3832_v28  ;;  %v3878_v28 = vld [vmem:[#allocation5 + $0x240] sm:$0xff]  }
  0x5c   :  { %3467 = vmatprep.subr.bf16.mxu0 %v3834_v30  ;;  %3488 = vmatpush3.bf16.msra.mxu1 %v3833_v29  ;;  %v3879_v29 = vld [vmem:[#allocation5 + $0x2c0] sm:$0xff]  }
  0x5d   :  { %3489 = vmatprep.subr.bf16.mxu1 %v3835_v31  ;;  %v3880_v30 = vld [vmem:[#allocation5 + $0x200] sm:$0xff]  }
  0x5e   :  { %v3881_v31 = vld [vmem:[#allocation5 + $0x280] sm:$0xff]  }
  0x5f   :  { %3468 = vmatpush3.bf16.msra.mxu0 %v3836_v32  ;;  %v3882_v32 = vld [vmem:[#allocation2 + $0x10] ss:$48 sps:$4 sm:$0xff]  }
  0x60   :  { %3490 = vmatpush3.bf16.msra.mxu1 %v3837_v34  ;;  %3497 = vmatprep.subr.bf16.mxu0 %v3850_v50  ;;  %v3884_v34 = vld [vmem:[#allocation2 + $0x70] ss:$48 sps:$4 sm:$0xff]   ;;  %v243_v39 = vrot.slane %v3882_v32, %v4212_v37  ;;  %v466_v50 = vrot.slane %v3892_v42, %v4212_v37  ;;  %v3930_v32 = vld [vmem:[#allocation2 + $0xd8] ss:$48 sps:$4 sm:$0xff]  }
  0x61   :  { %3519 = vmatprep.subr.bf16.mxu1 %v3851_v55  ;;  %v257_v40 = vrot.slane %v3884_v34, %v4212_v37  ;;  %v481_v55 = vcombine.low %v459_v44, %v473_v45  ;;  %v3932_v34 = vld [vmem:[#allocation2 + $0x138] ss:$48 sps:$4 sm:$0xff]   ;;  %v495_v41 = vrot.slane %v3930_v32, %v4212_v37  ;;  %v286_v44 = vrot.slane %v3934_v36, %v4212_v37  ;;  %v3978_v32 = vld [vmem:[#allocation2 + $0x24] ss:$48 sps:$4 sm:$0xff]  }
  0x62   :  { %2323 = vmatmul.mubr.bf16.vlgmr.msra.gmra.mxu0 %v645_v1  ;;  %v484_v58 = vcombine.high %v466_v50, %v480_v51  ;;  %v509_v42 = vrot.slane %v3932_v34, %v4212_v37  ;;  %v300_v45 = vrot.slane %v3935_v38, %v4212_v37  ;;  %v3979_v34 = vld [vmem:[#allocation2 + $0x84] ss:$48 sps:$4 sm:$0xff]  }
  0x63   :  { %2364 = vmatmul.mubr.bf16.vlgmr.msra.gmra.mxu1 %v647_v4  ;;  %3498 = vmatpush3.bf16.msra.mxu0 %v3852_v60  ;;  %v266_v48 = vcombine.high %v243_v39, %v257_v40  ;;  %v265_v54 = vcombine.low %v243_v39, %v257_v40  ;;  %v483_v60 = vcombine.low %v466_v50, %v480_v51  ;;  %v3900_v4 = vld [vmem:[#allocation5 + $0x330] sm:$0xff]   ;;  %v3936_v39 = vld [vmem:[#allocation2 + $0xdc] ss:$48 sps:$4 sm:$0xff]  }
  0x64   :  { %3520 = vmatpush3.bf16.msra.mxu1 %v3853_v63  ;;  %3499 = vmatprep.subr.bf16.mxu0 %v3854_v2  ;;  %v652_v1 = vpack.c.bf16 %v484_v58, %v268_v57  ;;  %v502_v46 = vrot.slane %v3936_v39, %v4212_v37  ;;  %v518_v49 = vcombine.high %v495_v41, %v509_v42  ;;  %v3980_v39 = vld [vmem:[#allocation2 + $0xe4] ss:$48 sps:$4 sm:$0xff]  }
  0x65   :  { %3521 = vmatprep.subr.bf16.mxu1 %v3855_v5  ;;  %v650_v62 = vpack.c.bf16 %v482_v53, %v266_v48  ;;  %v649_v63 = vpack.c.bf16 %v481_v55, %v265_v54  ;;  %v651_v2 = vpack.c.bf16 %v483_v60, %v267_v59  ;;  %v3901_v5 = vld [vmem:[#allocation5 + $0x3b0] sm:$0xff]   ;;  %v516_v50 = vrot.slane %v3937_v43, %v4212_v37  ;;  %v3941_v60 = vld [vmem:[#allocation5 + $0x4b8] sm:$0xff]  }
  0x66   :  { %2445 = vmatprep.mubr.bf16.mxu1 %v652_v1  ;;  %v304_v53 = vcombine.high %v286_v44, %v300_v45  ;;  %v517_v54 = vcombine.low %v495_v41, %v509_v42  ;;  %v303_v55 = vcombine.low %v286_v44, %v300_v45  ;;  %v3943_v1 = vld [vmem:[#allocation5 + $0x4f0] sm:$0xff]   ;;  %v322_v42 = vrot.slane %v3978_v32, %v4212_v37  ;;  %v3982_v44 = vld [vmem:[#allocation5 + $0x578] sm:$0xff]  }
  0x67   :  { %3500 = vmatpush3.bf16.msra.mxu0 %v3856_v6  ;;  %2404 = vmatprep.mubr.bf16.mxu0 %v650_v62  ;;  %v3902_v6 = vld [vmem:[#allocation5 + $0x368] sm:$0xff]   ;;  %v520_v58 = vcombine.high %v502_v46, %v516_v50  ;;  %v519_v59 = vcombine.low %v502_v46, %v516_v50  ;;  %v3942_v62 = vld [vmem:[#allocation5 + $0x470] sm:$0xff]   ;;  %v336_v43 = vrot.slane %v3979_v34, %v4212_v37 }
  0x68   :  { %3522 = vmatpush3.bf16.msra.mxu1 %v3857_v7  ;;  %3501 = vmatprep.subr.bf16.mxu0 %v3858_v8  ;;  %v3903_v7 = vld [vmem:[#allocation5 + $0x3e8] sm:$0xff]   ;;  %v538_v46 = vrot.slane %v3980_v39, %v4212_v37 }
  0x69   :  { %3523 = vmatprep.subr.bf16.mxu1 %v3859_v9  ;;  %v3904_v8 = vld [vmem:[#allocation5 + $0x328] sm:$0xff]  }
  0x6a   :  { %v3905_v9 = vld [vmem:[#allocation5 + $0x3a8] sm:$0xff]  }
  0x6b   :  { %3502 = vmatpush3.bf16.msra.mxu0 %v3860_v10  ;;  %v3906_v10 = vld [vmem:[#allocation5 + $0x360] sm:$0xff]   ;;  %v4023_v34 = vld [vmem:[#allocation2 + $0x8c] ss:$48 sps:$4 sm:$0xff]  }
  0x6c   :  { %3524 = vmatpush3.bf16.msra.mxu1 %v3861_v11  ;;  %3503 = vmatprep.subr.bf16.mxu0 %v3862_v12  ;;  %v3907_v11 = vld [vmem:[#allocation5 + $0x3e0] sm:$0xff]  }
  0x6d   :  { %3525 = vmatprep.subr.bf16.mxu1 %v3863_v13  ;;  %v3908_v12 = vld [vmem:[#allocation5 + $0x320] sm:$0xff]  }
  0x6e   :  { %v3909_v13 = vld [vmem:[#allocation5 + $0x3a0] sm:$0xff]  }
  0x6f   :  { %3504 = vmatpush3.bf16.msra.mxu0 %v3864_v14  ;;  %v3910_v14 = vld [vmem:[#allocation5 + $0x358] sm:$0xff]  }
  0x70   :  { %3526 = vmatpush3.bf16.msra.mxu1 %v3865_v15  ;;  %3505 = vmatprep.subr.bf16.mxu0 %v3866_v16  ;;  %v3911_v15 = vld [vmem:[#allocation5 + $0x3d8] sm:$0xff]  }
  0x71   :  { %3527 = vmatprep.subr.bf16.mxu1 %v3867_v17  ;;  %v3912_v16 = vld [vmem:[#allocation5 + $0x318] sm:$0xff]  }
  0x72   :  { %v3913_v17 = vld [vmem:[#allocation5 + $0x398] sm:$0xff]  }
  0x73   :  { %3506 = vmatpush3.bf16.msra.mxu0 %v3868_v18  ;;  %v3914_v18 = vld [vmem:[#allocation5 + $0x350] sm:$0xff]  }
  0x74   :  { %3528 = vmatpush3.bf16.msra.mxu1 %v3869_v19  ;;  %3507 = vmatprep.subr.bf16.mxu0 %v3870_v20  ;;  %v3915_v19 = vld [vmem:[#allocation5 + $0x3d0] sm:$0xff]  }
  0x75   :  { %3529 = vmatprep.subr.bf16.mxu1 %v3871_v21  ;;  %v3916_v20 = vld [vmem:[#allocation5 + $0x310] sm:$0xff]  }
  0x76   :  { %v3917_v21 = vld [vmem:[#allocation5 + $0x390] sm:$0xff]  }
  0x77   :  { %3508 = vmatpush3.bf16.msra.mxu0 %v3872_v22  ;;  %v3918_v22 = vld [vmem:[#allocation5 + $0x348] sm:$0xff]  }
  0x78   :  { %3530 = vmatpush3.bf16.msra.mxu1 %v3873_v23  ;;  %3509 = vmatprep.subr.bf16.mxu0 %v3874_v24  ;;  %v3919_v23 = vld [vmem:[#allocation5 + $0x3c8] sm:$0xff]  }
  0x79   :  { %3531 = vmatprep.subr.bf16.mxu1 %v3875_v25  ;;  %v3920_v24 = vld [vmem:[#allocation5 + $0x308] sm:$0xff]  }
  0x7a   :  { %v3921_v25 = vld [vmem:[#allocation5 + $0x388] sm:$0xff]  }
  0x7b   :  { %3510 = vmatpush3.bf16.msra.mxu0 %v3876_v26  ;;  %v3922_v26 = vld [vmem:[#allocation5 + $0x340] sm:$0xff]  }
  0x7c   :  { %3532 = vmatpush3.bf16.msra.mxu1 %v3877_v27  ;;  %3511 = vmatprep.subr.bf16.mxu0 %v3878_v28  ;;  %v3923_v27 = vld [vmem:[#allocation5 + $0x3c0] sm:$0xff]  }
  0x7d   :  { %3533 = vmatprep.subr.bf16.mxu1 %v3879_v29  ;;  %v3924_v28 = vld [vmem:[#allocation5 + $0x300] sm:$0xff]  }
  0x7e   :  { %v3925_v29 = vld [vmem:[#allocation5 + $0x380] sm:$0xff]  }
  0x7f   :  { %3512 = vmatpush3.bf16.msra.mxu0 %v3880_v30  ;;  %v3926_v30 = vld [vmem:[#allocation2 + $0x18] ss:$48 sps:$4 sm:$0xff]  }
  0x80   :  { %3534 = vmatpush3.bf16.msra.mxu1 %v3881_v31  ;;  %3541 = vmatprep.subr.bf16.mxu0 %v3894_v47  ;;  %v3928_v31 = vld [vmem:[#allocation2 + $0x78] ss:$48 sps:$4 sm:$0xff]   ;;  %v279_v35 = vrot.slane %v3926_v30, %v4212_v37  ;;  %v3974_v30 = vld [vmem:[#allocation2 + $0xe0] ss:$48 sps:$4 sm:$0xff]  }
  0x81   :  { %3563 = vmatprep.subr.bf16.mxu1 %v3895_v52  ;;  %v293_v40 = vrot.slane %v3928_v31, %v4212_v37  ;;  %v3938_v47 = vld [vmem:[#allocation5 + $0x478] sm:$0xff]   ;;  %v3976_v31 = vld [vmem:[#allocation2 + $0x140] ss:$48 sps:$4 sm:$0xff]   ;;  %v531_v38 = vrot.slane %v3974_v30, %v4212_v37 }
  0x82   :  { %2405 = vmatmul.mubr.bf16.vlgmr.msra.gmra.mxu0 %v649_v63  ;;  %v3939_v52 = vld [vmem:[#allocation5 + $0x4f8] sm:$0xff]   ;;  %v656_v63 = vpack.c.bf16 %v520_v58, %v304_v53  ;;  %v545_v41 = vrot.slane %v3976_v31, %v4212_v37  ;;  %v339_v53 = vcombine.low %v322_v42, %v336_v43 }
  0x83   :  { %2446 = vmatmul.mubr.bf16.vlgmr.msra.gmra.mxu1 %v651_v2  ;;  %3542 = vmatpush3.bf16.msra.mxu0 %v3896_v56  ;;  %v302_v48 = vcombine.high %v279_v35, %v293_v40  ;;  %v301_v51 = vcombine.low %v279_v35, %v293_v40  ;;  %v3940_v56 = vld [vmem:[#allocation5 + $0x438] sm:$0xff]   ;;  %v3944_v2 = vld [vmem:[#allocation5 + $0x430] sm:$0xff]  }
  0x84   :  { %3564 = vmatpush3.bf16.msra.mxu1 %v3897_v61  ;;  %3543 = vmatprep.subr.bf16.mxu0 %v3898_v0  ;;  %v655_v0 = vpack.c.bf16 %v519_v59, %v303_v55  ;;  %v3981_v40 = vld [vmem:[#allocation2 + $0x144] ss:$48 sps:$4 sm:$0xff]   ;;  %v554_v50 = vcombine.high %v531_v38, %v545_v41  ;;  %v4022_v30 = vld [vmem:[#allocation2 + $0x2c] ss:$48 sps:$4 sm:$0xff]  }
  0x85   :  { %3565 = vmatprep.subr.bf16.mxu1 %v3899_v3  ;;  %v654_v57 = vpack.c.bf16 %v518_v49, %v302_v48  ;;  %v653_v61 = vpack.c.bf16 %v517_v54, %v301_v51  ;;  %2527 = vmatprep.mubr.bf16.mxu1 %v656_v63  ;;  %v3945_v3 = vld [vmem:[#allocation5 + $0x4b0] sm:$0xff]   ;;  %v3983_v49 = vld [vmem:[#allocation5 + $0x5f8] sm:$0xff]   ;;  %v340_v51 = vcombine.high %v322_v42, %v336_v43 }
  0x86   :  { %v3984_v54 = vld [vmem:[#allocation5 + $0x538] sm:$0xff]   ;;  %v3987_v63 = vld [vmem:[#allocation5 + $0x5f0] sm:$0xff]   ;;  %v372_v42 = vrot.slane %v4023_v34, %v4212_v37 }
  0x87   :  { %3544 = vmatpush3.bf16.msra.mxu0 %v3900_v4  ;;  %2486 = vmatprep.mubr.bf16.mxu0 %v654_v57  ;;  %v3946_v4 = vld [vmem:[#allocation5 + $0x468] sm:$0xff]   ;;  %v3985_v57 = vld [vmem:[#allocation5 + $0x5b8] sm:$0xff]  }
  0x88   :  { %3566 = vmatpush3.bf16.msra.mxu1 %v3901_v5  ;;  %3545 = vmatprep.subr.bf16.mxu0 %v3902_v6  ;;  %v3947_v5 = vld [vmem:[#allocation5 + $0x4e8] sm:$0xff]  }
  0x89   :  { %3567 = vmatprep.subr.bf16.mxu1 %v3903_v7  ;;  %v3948_v6 = vld [vmem:[#allocation5 + $0x428] sm:$0xff]  }
  0x8a   :  { %v3949_v7 = vld [vmem:[#allocation5 + $0x4a8] sm:$0xff]  }
  0x8b   :  { %3546 = vmatpush3.bf16.msra.mxu0 %v3904_v8  ;;  %v3950_v8 = vld [vmem:[#allocation5 + $0x460] sm:$0xff]  }
  0x8c   :  { %3568 = vmatpush3.bf16.msra.mxu1 %v3905_v9  ;;  %3547 = vmatprep.subr.bf16.mxu0 %v3906_v10  ;;  %v3951_v9 = vld [vmem:[#allocation5 + $0x4e0] sm:$0xff]  }
  0x8d   :  { %3569 = vmatprep.subr.bf16.mxu1 %v3907_v11  ;;  %v3952_v10 = vld [vmem:[#allocation5 + $0x420] sm:$0xff]  }
  0x8e   :  { %v3953_v11 = vld [vmem:[#allocation5 + $0x4a0] sm:$0xff]  }
  0x8f   :  { %3548 = vmatpush3.bf16.msra.mxu0 %v3908_v12  ;;  %v3954_v12 = vld [vmem:[#allocation5 + $0x458] sm:$0xff]  }
  0x90   :  { %3570 = vmatpush3.bf16.msra.mxu1 %v3909_v13  ;;  %3549 = vmatprep.subr.bf16.mxu0 %v3910_v14  ;;  %v3955_v13 = vld [vmem:[#allocation5 + $0x4d8] sm:$0xff]  }
  0x91   :  { %3571 = vmatprep.subr.bf16.mxu1 %v3911_v15  ;;  %v3956_v14 = vld [vmem:[#allocation5 + $0x418] sm:$0xff]  }
  0x92   :  { %v3957_v15 = vld [vmem:[#allocation5 + $0x498] sm:$0xff]  }
  0x93   :  { %3550 = vmatpush3.bf16.msra.mxu0 %v3912_v16  ;;  %v3958_v16 = vld [vmem:[#allocation5 + $0x450] sm:$0xff]  }
  0x94   :  { %3572 = vmatpush3.bf16.msra.mxu1 %v3913_v17  ;;  %3551 = vmatprep.subr.bf16.mxu0 %v3914_v18  ;;  %v3959_v17 = vld [vmem:[#allocation5 + $0x4d0] sm:$0xff]  }
  0x95   :  { %3573 = vmatprep.subr.bf16.mxu1 %v3915_v19  ;;  %v3960_v18 = vld [vmem:[#allocation5 + $0x410] sm:$0xff]  }
  0x96   :  { %v3961_v19 = vld [vmem:[#allocation5 + $0x490] sm:$0xff]  }
  0x97   :  { %3552 = vmatpush3.bf16.msra.mxu0 %v3916_v20  ;;  %v3962_v20 = vld [vmem:[#allocation5 + $0x448] sm:$0xff]  }
  0x98   :  { %3574 = vmatpush3.bf16.msra.mxu1 %v3917_v21  ;;  %3553 = vmatprep.subr.bf16.mxu0 %v3918_v22  ;;  %v3963_v21 = vld [vmem:[#allocation5 + $0x4c8] sm:$0xff]  }
  0x99   :  { %3575 = vmatprep.subr.bf16.mxu1 %v3919_v23  ;;  %v3964_v22 = vld [vmem:[#allocation5 + $0x408] sm:$0xff]  }
  0x9a   :  { %v3965_v23 = vld [vmem:[#allocation5 + $0x488] sm:$0xff]  }
  0x9b   :  { %3554 = vmatpush3.bf16.msra.mxu0 %v3920_v24  ;;  %v3966_v24 = vld [vmem:[#allocation5 + $0x440] sm:$0xff]  }
  0x9c   :  { %3576 = vmatpush3.bf16.msra.mxu1 %v3921_v25  ;;  %3555 = vmatprep.subr.bf16.mxu0 %v3922_v26  ;;  %v3967_v25 = vld [vmem:[#allocation5 + $0x4c0] sm:$0xff]  }
  0x9d   :  { %3577 = vmatprep.subr.bf16.mxu1 %v3923_v27  ;;  %v3968_v26 = vld [vmem:[#allocation5 + $0x400] sm:$0xff]  }
  0x9e   :  { %v3969_v27 = vld [vmem:[#allocation5 + $0x480] sm:$0xff]  }
  0x9f   :  { %3556 = vmatpush3.bf16.msra.mxu0 %v3924_v28  ;;  %v3970_v28 = vld [vmem:[#allocation2 + $0x20] ss:$48 sps:$4 sm:$0xff]  }
  0xa0   :  { %3578 = vmatpush3.bf16.msra.mxu1 %v3925_v29  ;;  %3585 = vmatprep.subr.bf16.mxu0 %v3938_v47  ;;  %v3972_v29 = vld [vmem:[#allocation2 + $0x80] ss:$48 sps:$4 sm:$0xff]   ;;  %v315_v35 = vrot.slane %v3970_v28, %v4212_v37  ;;  %v552_v47 = vrot.slane %v3981_v40, %v4212_v37  ;;  %v4018_v28 = vld [vmem:[#allocation2 + $0xe8] ss:$48 sps:$4 sm:$0xff]   ;;  %v358_v40 = vrot.slane %v4022_v30, %v4212_v37 }
  0xa1   :  { %3607 = vmatprep.subr.bf16.mxu1 %v3939_v52  ;;  %v329_v36 = vrot.slane %v3972_v29, %v4212_v37  ;;  %v553_v52 = vcombine.low %v531_v38, %v545_v41  ;;  %v4020_v29 = vld [vmem:[#allocation2 + $0x148] ss:$48 sps:$4 sm:$0xff]   ;;  %v567_v38 = vrot.slane %v4018_v28, %v4212_v37 }
  0xa2   :  { %2487 = vmatmul.mubr.bf16.vlgmr.msra.gmra.mxu0 %v653_v61  ;;  %v556_v55 = vcombine.high %v538_v46, %v552_v47  ;;  %v581_v39 = vrot.slane %v4020_v29, %v4212_v37 }
  0xa3   :  { %3586 = vmatpush3.bf16.msra.mxu0 %v3940_v56  ;;  %2528 = vmatmul.mubr.bf16.vlgmr.msra.gmra.mxu1 %v655_v0  ;;  %v338_v45 = vcombine.high %v315_v35, %v329_v36  ;;  %v337_v48 = vcombine.low %v315_v35, %v329_v36  ;;  %v555_v56 = vcombine.low %v538_v46, %v552_v47  ;;  %v3988_v0 = vld [vmem:[#allocation5 + $0x530] sm:$0xff]   ;;  %v4024_v35 = vld [vmem:[#allocation2 + $0xec] ss:$48 sps:$4 sm:$0xff]  }
  0xa4   :  { %3587 = vmatprep.subr.bf16.mxu0 %v3942_v62  ;;  %3608 = vmatpush3.bf16.msra.mxu1 %v3941_v60  ;;  %v3986_v60 = vld [vmem:[#allocation5 + $0x570] sm:$0xff]   ;;  %v660_v61 = vpack.c.bf16 %v556_v55, %v340_v51  ;;  %v4025_v36 = vld [vmem:[#allocation2 + $0x14c] ss:$48 sps:$4 sm:$0xff]   ;;  %v574_v43 = vrot.slane %v4024_v35, %v4212_v37  ;;  %v589_v47 = vcombine.low %v567_v38, %v581_v39 }
  0xa5   :  { %3609 = vmatprep.subr.bf16.mxu1 %v3943_v1  ;;  %v658_v58 = vpack.c.bf16 %v554_v50, %v338_v45  ;;  %v657_v59 = vpack.c.bf16 %v553_v52, %v337_v48  ;;  %v659_v62 = vpack.c.bf16 %v555_v56, %v339_v53  ;;  %v3989_v1 = vld [vmem:[#allocation5 + $0x5b0] sm:$0xff]   ;;  %v590_v45 = vcombine.high %v567_v38, %v581_v39  ;;  %v4026_v56 = vld [vmem:[%s4370_s3 + $0x38] sm:$0xff]  }
  0xa6   :  { %2609 = vmatprep.mubr.bf16.mxu1 %v660_v61  ;;  %v376_v48 = vcombine.high %v358_v40, %v372_v42  ;;  %v375_v50 = vcombine.low %v358_v40, %v372_v42  ;;  %v4031_v61 = vld [vmem:[%s4370_s3 + $0x10] sm:$0xff]  }
  0xa7   :  { %3588 = vmatpush3.bf16.msra.mxu0 %v3944_v2  ;;  %2568 = vmatprep.mubr.bf16.mxu0 %v658_v58  ;;  %v3990_v2 = vld [vmem:[#allocation5 + $0x568] sm:$0xff]  }
  0xa8   :  { %3589 = vmatprep.subr.bf16.mxu0 %v3946_v4  ;;  %3610 = vmatpush3.bf16.msra.mxu1 %v3945_v3  ;;  %v3991_v3 = vld [vmem:[#allocation5 + $0x5e8] sm:$0xff]  }
  0xa9   :  { %3611 = vmatprep.subr.bf16.mxu1 %v3947_v5  ;;  %v3992_v4 = vld [vmem:[#allocation5 + $0x528] sm:$0xff]  }
  0xaa   :  { %v3993_v5 = vld [vmem:[#allocation5 + $0x5a8] sm:$0xff]  }
  0xab   :  { %3590 = vmatpush3.bf16.msra.mxu0 %v3948_v6  ;;  %v3994_v6 = vld [vmem:[#allocation5 + $0x560] sm:$0xff]   ;;  %v4028_v58 = vld [vmem:[%s4370_s3 + $0x28] sm:$0xff]  }
  0xac   :  { %3591 = vmatprep.subr.bf16.mxu0 %v3950_v8  ;;  %3612 = vmatpush3.bf16.msra.mxu1 %v3949_v7  ;;  %v3995_v7 = vld [vmem:[#allocation5 + $0x5e0] sm:$0xff]  }
  0xad   :  { %3613 = vmatprep.subr.bf16.mxu1 %v3951_v9  ;;  %v3996_v8 = vld [vmem:[#allocation5 + $0x520] sm:$0xff]  }
  0xae   :  { %v3997_v9 = vld [vmem:[#allocation5 + $0x5a0] sm:$0xff]  }
  0xaf   :  { %3592 = vmatpush3.bf16.msra.mxu0 %v3952_v10  ;;  %v3998_v10 = vld [vmem:[#allocation5 + $0x558] sm:$0xff]  }
  0xb0   :  { %3593 = vmatprep.subr.bf16.mxu0 %v3954_v12  ;;  %3614 = vmatpush3.bf16.msra.mxu1 %v3953_v11  ;;  %v3999_v11 = vld [vmem:[#allocation5 + $0x5d8] sm:$0xff]  }
  0xb1   :  { %3615 = vmatprep.subr.bf16.mxu1 %v3955_v13  ;;  %v4000_v12 = vld [vmem:[#allocation5 + $0x518] sm:$0xff]  }
  0xb2   :  { %v4001_v13 = vld [vmem:[#allocation5 + $0x598] sm:$0xff]  }
  0xb3   :  { %3594 = vmatpush3.bf16.msra.mxu0 %v3956_v14  ;;  %v4002_v14 = vld [vmem:[#allocation5 + $0x550] sm:$0xff]  }
  0xb4   :  { %3595 = vmatprep.subr.bf16.mxu0 %v3958_v16  ;;  %3616 = vmatpush3.bf16.msra.mxu1 %v3957_v15  ;;  %v4003_v15 = vld [vmem:[#allocation5 + $0x5d0] sm:$0xff]  }
  0xb5   :  { %3617 = vmatprep.subr.bf16.mxu1 %v3959_v17  ;;  %v4004_v16 = vld [vmem:[#allocation5 + $0x510] sm:$0xff]  }
  0xb6   :  { %v4005_v17 = vld [vmem:[#allocation5 + $0x590] sm:$0xff]  }
  0xb7   :  { %3596 = vmatpush3.bf16.msra.mxu0 %v3960_v18  ;;  %v4006_v18 = vld [vmem:[#allocation5 + $0x548] sm:$0xff]  }
  0xb8   :  { %3597 = vmatprep.subr.bf16.mxu0 %v3962_v20  ;;  %3618 = vmatpush3.bf16.msra.mxu1 %v3961_v19  ;;  %v4007_v19 = vld [vmem:[#allocation5 + $0x5c8] sm:$0xff]  }
  0xb9   :  { %3619 = vmatprep.subr.bf16.mxu1 %v3963_v21  ;;  %v4008_v20 = vld [vmem:[#allocation5 + $0x508] sm:$0xff]  }
  0xba   :  { %v4009_v21 = vld [vmem:[#allocation5 + $0x588] sm:$0xff]  }
  0xbb   :  { %3598 = vmatpush3.bf16.msra.mxu0 %v3964_v22  ;;  %v4010_v22 = vld [vmem:[#allocation5 + $0x540] sm:$0xff]  }
  0xbc   :  { %3599 = vmatprep.subr.bf16.mxu0 %v3966_v24  ;;  %3620 = vmatpush3.bf16.msra.mxu1 %v3965_v23  ;;  %v4011_v23 = vld [vmem:[#allocation5 + $0x5c0] sm:$0xff]  }
  0xbd   :  { %3621 = vmatprep.subr.bf16.mxu1 %v3967_v25  ;;  %v4012_v24 = vld [vmem:[#allocation5 + $0x500] sm:$0xff]  }
  0xbe   :  { %v4013_v25 = vld [vmem:[#allocation5 + $0x580] sm:$0xff]  }
  0xbf   :  { %3600 = vmatpush3.bf16.msra.mxu0 %v3968_v26  ;;  %v4014_v26 = vld [vmem:[#allocation2 + $0x28] ss:$48 sps:$4 sm:$0xff]  }
  0xc0   :  { %3622 = vmatpush3.bf16.msra.mxu1 %v3969_v27  ;;  %3629 = vmatprep.subr.bf16.mxu0 %v3982_v44  ;;  %v4016_v27 = vld [vmem:[#allocation2 + $0x88] ss:$48 sps:$4 sm:$0xff]   ;;  %v351_v31 = vrot.slane %v4014_v26, %v4212_v37  ;;  %v588_v44 = vrot.slane %v4025_v36, %v4212_v37 }
  0xc1   :  { %3651 = vmatprep.subr.bf16.mxu1 %v3983_v49  ;;  %v365_v32 = vrot.slane %v4016_v27, %v4212_v37  ;;  %v4141_v37 = vmov 0.0   ;;  %v3182_v27 = vld [vmem:[%s4369_s2] ss:$0 sm:$0xff] }
  0xc2   :  { %2569 = vmatmul.mubr.bf16.vlgmr.msra.gmra.mxu0 %v657_v59  ;;  %v592_v49 = vcombine.high %v574_v43, %v588_v44  ;;  %v591_v51 = vcombine.low %v574_v43, %v588_v44  ;;  %v4029_v59 = vld [vmem:[%s4370_s3 + $0x20] sm:$0xff]  }
  0xc3   :  { %2610 = vmatmul.mubr.bf16.vlgmr.msra.gmra.mxu1 %v659_v62  ;;  %3630 = vmatpush3.bf16.msra.mxu0 %v3984_v54  ;;  %v374_v41 = vcombine.high %v351_v31, %v365_v32  ;;  %v373_v46 = vcombine.low %v351_v31, %v365_v32  ;;  %v4032_v62 = vld [vmem:[%s4370_s3 + $0x8] sm:$0xff]  }
  0xc4   :  { %3652 = vmatpush3.bf16.msra.mxu1 %v3985_v57  ;;  %3631 = vmatprep.subr.bf16.mxu0 %v3986_v60  ;;  %v664_v54 = vpack.c.bf16 %v592_v49, %v376_v48  ;;  %v663_v55 = vpack.c.bf16 %v591_v51, %v375_v50  ;;  %v4027_v57 = vld [vmem:[%s4370_s3 + $0x30] sm:$0xff]   ;;  %v4030_v60 = vld [vmem:[%s4370_s3 + $0x18] sm:$0xff]  }
  0xc5   :  { %3653 = vmatprep.subr.bf16.mxu1 %v3987_v63  ;;  %v662_v52 = vpack.c.bf16 %v590_v45, %v374_v41  ;;  %v661_v53 = vpack.c.bf16 %v589_v47, %v373_v46  ;;  %v4033_v63 = vld [vmem:[%s4370_s3] sm:$0xff]  }
  0xc6   :  { %2691 = vmatprep.mubr.bf16.mxu1 %v664_v54 }
  0xc7   :  { %3632 = vmatpush3.bf16.msra.mxu0 %v3988_v0  ;;  %2650 = vmatprep.mubr.bf16.mxu0 %v662_v52  ;;  %v4034_v0 = vld [vmem:[%s4372_s5 + $0x18] sm:$0xff]  }
  0xc8   :  { %3654 = vmatpush3.bf16.msra.mxu1 %v3989_v1  ;;  %3633 = vmatprep.subr.bf16.mxu0 %v3990_v2 }
  0xc9   :  { %3655 = vmatprep.subr.bf16.mxu1 %v3991_v3 }
  0xcb   :  { %3634 = vmatpush3.bf16.msra.mxu0 %v3992_v4 }
  0xcc   :  { %3656 = vmatpush3.bf16.msra.mxu1 %v3993_v5  ;;  %3635 = vmatprep.subr.bf16.mxu0 %v3994_v6 }
  0xcd   :  { %3657 = vmatprep.subr.bf16.mxu1 %v3995_v7 }
  0xcf   :  { %3636 = vmatpush3.bf16.msra.mxu0 %v3996_v8 }
  0xd0   :  { %3658 = vmatpush3.bf16.msra.mxu1 %v3997_v9  ;;  %3637 = vmatprep.subr.bf16.mxu0 %v3998_v10 }
  0xd1   :  { %3659 = vmatprep.subr.bf16.mxu1 %v3999_v11 }
  0xd3   :  { %3638 = vmatpush3.bf16.msra.mxu0 %v4000_v12 }
  0xd4   :  { %3660 = vmatpush3.bf16.msra.mxu1 %v4001_v13  ;;  %3639 = vmatprep.subr.bf16.mxu0 %v4002_v14 }
  0xd5   :  { %3661 = vmatprep.subr.bf16.mxu1 %v4003_v15 }
  0xd7   :  { %3640 = vmatpush3.bf16.msra.mxu0 %v4004_v16 }
  0xd8   :  { %3662 = vmatpush3.bf16.msra.mxu1 %v4005_v17  ;;  %3641 = vmatprep.subr.bf16.mxu0 %v4006_v18 }
  0xd9   :  { %3663 = vmatprep.subr.bf16.mxu1 %v4007_v19 }
  0xdb   :  { %3642 = vmatpush3.bf16.msra.mxu0 %v4008_v20 }
  0xdc   :  { %3664 = vmatpush3.bf16.msra.mxu1 %v4009_v21  ;;  %3643 = vmatprep.subr.bf16.mxu0 %v4010_v22 }
  0xdd   :  { %3665 = vmatprep.subr.bf16.mxu1 %v4011_v23 }
  0xdf   :  { %3644 = vmatpush3.bf16.msra.mxu0 %v4012_v24 }
  0xe0   :  { %3666 = vmatpush3.bf16.msra.mxu1 %v4013_v25  ;;  %3696 = vmatprep.subr.bf16.mxu0 %v4141_v37 }
  0xe1   :  { %3716 = vmatprep.subr.bf16.mxu1 %v4141_v37 }
  0xe2   :  { %2651 = vmatmul.mubr.bf16.vlgmr.msra.gmra.mxu0 %v661_v53 }
  0xe3   :  { %2692 = vmatmul.mubr.bf16.vlgmr.msra.gmra.mxu1 %v663_v55  ;;  %3697 = vmatpush3.bf16.msra.mxu0 %v4026_v56 }
  0xe4   :  { %3698 = vmatprep.subr.bf16.mxu0 %v4141_v37  ;;  %3712 = vmatprep.mubr.msk.bf16.mxu0 %vm4142_vm0, %v4141_v37 }
  0xe5   :  { %3724 = vmatprep.mubr.msk.bf16.mxu1 %vm4142_vm0, %v4141_v37  ;;  %3717 = vmatpush3.bf16.msra.mxu1 %v4034_v0 }
  0xe6   :  { %3718 = vmatprep.subr.bf16.mxu1 %v4141_v37 }
  0xe7   :  { %3699 = vmatpush3.bf16.msra.mxu0 %v4027_v57 }
  0xe8   :  { %3700 = vmatprep.subr.bf16.mxu0 %v4141_v37 }
  0xeb   :  { %3701 = vmatpush3.bf16.msra.mxu0 %v4028_v58 }
  0xec   :  { %3702 = vmatprep.subr.bf16.mxu0 %v4141_v37 }
  0xef   :  { %3703 = vmatpush3.bf16.msra.mxu0 %v4029_v59 }
  0xf0   :  { %3704 = vmatprep.subr.bf16.mxu0 %v4141_v37 }
  0xf3   :  { %3705 = vmatpush3.bf16.msra.mxu0 %v4030_v60 }
  0xf4   :  { %3706 = vmatprep.subr.bf16.mxu0 %v4141_v37 }
  0xf7   :  { %3707 = vmatpush3.bf16.msra.mxu0 %v4031_v61 }
  0xf8   :  { %3708 = vmatprep.subr.bf16.mxu0 %v4141_v37 }
  0xfb   :  { %3709 = vmatpush3.bf16.msra.mxu0 %v4032_v62 }
  0xfc   :  { %3710 = vmatprep.subr.bf16.mxu0 %v4141_v37 }
  0xff   :  { %3711 = vmatpush3.bf16.msra.mxu0 %v4033_v63 }
 0x102   :  { %v3425_v1 = vpop.f32.mrf.mxu0 }
 0x103   :  { %v3447_v2 = vpop.f32.mrf.mxu1 }
 0x104   :  { %v3426_v3 = vpop.f32.mrf.mxu0 }
 0x105   :  { %v3448_v4 = vpop.f32.mrf.mxu1  ;;  %v3427_v25 = vadd.f32 %v3426_v3, %v3425_v1 }
 0x106   :  { %v3428_v5 = vpop.f32.mrf.mxu0  ;;  %v3449_v31 = vadd.f32 %v3448_v4, %v3447_v2 }
 0x107   :  { %v3450_v6 = vpop.f32.mrf.mxu1  ;;  %v2243_v30 = vadd.f32 %v3427_v25, %v3182_v27 }
 0x108   :  { %v3429_v7 = vpop.f32.mrf.mxu0 }
 0x109   :  { %v3451_v9 = vpop.f32.mrf.mxu1  ;;  %v3430_v32 = vadd.f32 %v3429_v7, %v3428_v5  ;;  %v2284_v38 = vadd.f32 %v3449_v31, %v2243_v30 }
 0x10a   :  { %v3452_v40 = vadd.f32 %v3451_v9, %v3450_v6 }
 0x10b   :  { %v2246_v39 = vadd.f32 %v3430_v32, %v3182_v27 }
 0x10d   :  { %v2287_v46 = vadd.f32 %v3452_v40, %v2246_v39 }
 0x122   :  { %v3469_v8 = vpop.f32.mrf.mxu0 }
 0x123   :  { %v3491_v10 = vpop.f32.mrf.mxu1 }
 0x124   :  { %v3470_v11 = vpop.f32.mrf.mxu0 }
 0x125   :  { %v3492_v12 = vpop.f32.mrf.mxu1  ;;  %v3471_v34 = vadd.f32 %v3470_v11, %v3469_v8 }
 0x126   :  { %v3472_v13 = vpop.f32.mrf.mxu0  ;;  %v3493_v42 = vadd.f32 %v3492_v12, %v3491_v10 }
 0x127   :  { %v3494_v14 = vpop.f32.mrf.mxu1  ;;  %v2325_v41 = vadd.f32 %v3471_v34, %v2284_v38 }
 0x128   :  { %v3473_v15 = vpop.f32.mrf.mxu0 }
 0x129   :  { %v3495_v17 = vpop.f32.mrf.mxu1  ;;  %v3474_v43 = vadd.f32 %v3473_v15, %v3472_v13  ;;  %v2366_v49 = vadd.f32 %v3493_v42, %v2325_v41  ;;  %v4035_v41 = vld [vmem:[%s4372_s5 + $0x10] sm:$0xff]   ;;  %v4036_v42 = vld [vmem:[%s4372_s5 + $0x8] sm:$0xff]  }
 0x12a   :  { %v3496_v52 = vadd.f32 %v3495_v17, %v3494_v14  ;;  %3719 = vmatpush3.bf16.msra.mxu1 %v4035_v41 }
 0x12b   :  { %v2328_v50 = vadd.f32 %v3474_v43, %v2287_v46  ;;  %3720 = vmatprep.subr.bf16.mxu1 %v4141_v37  ;;  %v4037_v43 = vld [vmem:[%s4372_s5] sm:$0xff]  }
 0x12d   :  { %v2369_v58 = vadd.f32 %v3496_v52, %v2328_v50 }
 0x12e   :  { %3721 = vmatpush3.bf16.msra.mxu1 %v4036_v42 }
 0x12f   :  { %3722 = vmatprep.subr.bf16.mxu1 %v4141_v37 }
 0x132   :  { %3723 = vmatpush3.bf16.msra.mxu1 %v4037_v43 }
 0x133   :  { %3728 = vmatprep.subr.bf16.mxu1 %v4141_v37 }
 0x142   :  { %v3513_v16 = vpop.f32.mrf.mxu0 }
 0x143   :  { %v3535_v18 = vpop.f32.mrf.mxu1 }
 0x144   :  { %v3514_v19 = vpop.f32.mrf.mxu0 }
 0x145   :  { %v3536_v20 = vpop.f32.mrf.mxu1  ;;  %v3515_v47 = vadd.f32 %v3514_v19, %v3513_v16 }
 0x146   :  { %v3516_v21 = vpop.f32.mrf.mxu0  ;;  %v3537_v54 = vadd.f32 %v3536_v20, %v3535_v18 }
 0x147   :  { %v3538_v22 = vpop.f32.mrf.mxu1  ;;  %v2407_v53 = vadd.f32 %v3515_v47, %v2366_v49 }
 0x148   :  { %v3517_v23 = vpop.f32.mrf.mxu0 }
 0x149   :  { %v3539_v26 = vpop.f32.mrf.mxu1  ;;  %v3518_v55 = vadd.f32 %v3517_v23, %v3516_v21  ;;  %v2448_v60 = vadd.f32 %v3537_v54, %v2407_v53  ;;  %v4038_v53 = vld [vmem:[%s4374_s7 + $0x38] sm:$0xff]  }
 0x14a   :  { %v3540_v0 = vadd.f32 %v3539_v26, %v3538_v22 }
 0x14b   :  { %v2410_v61 = vadd.f32 %v3518_v55, %v2369_v58  ;;  %v4039_v55 = vld [vmem:[%s4374_s7 + $0x30] sm:$0xff]   ;;  %v4042_v58 = vld [vmem:[%s4374_s7 + $0x18] sm:$0xff]  }
 0x14d   :  { %v2451_v4 = vadd.f32 %v3540_v0, %v2410_v61  ;;  %v4045_v61 = vld [vmem:[%s4374_s7] sm:$0xff]  }
 0x162   :  { %v3557_v24 = vpop.f32.mrf.mxu0 }
 0x163   :  { %v3579_v28 = vpop.f32.mrf.mxu1 }
 0x164   :  { %v3558_v29 = vpop.f32.mrf.mxu0 }
 0x165   :  { %v3580_v35 = vpop.f32.mrf.mxu1  ;;  %v3559_v59 = vadd.f32 %v3558_v29, %v3557_v24 }
 0x166   :  { %v3560_v36 = vpop.f32.mrf.mxu0  ;;  %v3581_v2 = vadd.f32 %v3580_v35, %v3579_v28 }
 0x167   :  { %v3582_v44 = vpop.f32.mrf.mxu1  ;;  %v2489_v1 = vadd.f32 %v3559_v59, %v2448_v60  ;;  %v4043_v59 = vld [vmem:[%s4374_s7 + $0x10] sm:$0xff]   ;;  %v4044_v60 = vld [vmem:[%s4374_s7 + $0x8] sm:$0xff]  }
 0x168   :  { %v3561_v45 = vpop.f32.mrf.mxu0 }
 0x169   :  { %v3583_v51 = vpop.f32.mrf.mxu1  ;;  %v3562_v3 = vadd.f32 %v3561_v45, %v3560_v36  ;;  %v2530_v8 = vadd.f32 %v3581_v2, %v2489_v1  ;;  %v3384_v2 = vld [vmem:[%s4373_s6] ss:$0 sm:$0xff] }
 0x16a   :  { %v3584_v10 = vadd.f32 %v3583_v51, %v3582_v44  ;;  %v3375_v44 = vld [vmem:[%s4371_s4] ss:$0 sm:$0xff] }
 0x16b   :  { %v2492_v9 = vadd.f32 %v3562_v3, %v2451_v4 }
 0x16d   :  { %v2533_v16 = vadd.f32 %v3584_v10, %v2492_v9 }
 0x182   :  { %v3601_v48 = vpop.f32.mrf.mxu0 }
 0x183   :  { %v3623_v56 = vpop.f32.mrf.mxu1 }
 0x184   :  { %v3602_v57 = vpop.f32.mrf.mxu0 }
 0x185   :  { %v3624_v62 = vpop.f32.mrf.mxu1  ;;  %v3603_v5 = vadd.f32 %v3602_v57, %v3601_v48  ;;  %v4041_v57 = vld [vmem:[%s4374_s7 + $0x20] sm:$0xff]  }
 0x186   :  { %v3604_v63 = vpop.f32.mrf.mxu0  ;;  %v3625_v12 = vadd.f32 %v3624_v62, %v3623_v56  ;;  %v4040_v56 = vld [vmem:[%s4374_s7 + $0x28] sm:$0xff]   ;;  %v4143_v62 = vmov 1966171168  }
 0x187   :  { %v3626_v6 = vpop.f32.mrf.mxu1  ;;  %v2571_v11 = vadd.f32 %v3603_v5, %v2530_v8 }
 0x188   :  { %v3605_v7 = vpop.f32.mrf.mxu0 }
 0x189   :  { %v3606_v13 = vadd.f32 %v3605_v7, %v3604_v63  ;;  %v3627_v14 = vpop.f32.mrf.mxu1  ;;  %v2612_v19 = vadd.f32 %v3625_v12, %v2571_v11  ;;  %v3018_v63 = vunpack.c.l.s4 %v4143_v62 }
 0x18a   :  { %v3628_v24 = vadd.f32 %v3627_v14, %v3626_v6 }
 0x18b   :  { %v2574_v20 = vadd.f32 %v3606_v13, %v2533_v16  ;;  %v3019_v1 = vunpack.c.0.s8 %v3018_v63 }
 0x18d   :  { %v2615_v28 = vadd.f32 %v3628_v24, %v2574_v20  ;;  %v3022_v7 = vsub.s32 %v3019_v1, %v4209_v33 }
 0x1a2   :  { %v3645_v15 = vpop.f32.mrf.mxu0 }
 0x1a3   :  { %v3667_v17 = vpop.f32.mrf.mxu1 }
 0x1a4   :  { %v3646_v18 = vpop.f32.mrf.mxu0 }
 0x1a5   :  { %v3647_v21 = vadd.f32 %v3646_v18, %v3645_v15  ;;  %v3668_v22 = vpop.f32.mrf.mxu1 }
 0x1a6   :  { %v3648_v23 = vpop.f32.mrf.mxu0  ;;  %v3669_v29 = vadd.f32 %v3668_v22, %v3667_v17  ;;  %v3390_v22 = vld [vmem:[%s4375_s8] ss:$0 sm:$0xff] }
 0x1a7   :  { %v2653_v25 = vadd.f32 %v3647_v21, %v2612_v19  ;;  %v3670_v26 = vpop.f32.mrf.mxu1 }
 0x1a8   :  { %v3649_v27 = vpop.f32.mrf.mxu0 }
 0x1a9   :  { %v3650_v30 = vadd.f32 %v3649_v27, %v3648_v23  ;;  %v3671_v31 = vpop.f32.mrf.mxu1  ;;  %v2694_v32 = vadd.f32 %v3669_v29, %v2653_v25 }
 0x1aa   :  { %v3672_v35 = vadd.f32 %v3671_v31, %v3670_v26 }
 0x1ab   :  { %v2656_v34 = vadd.f32 %v3650_v30, %v2615_v28  ;;  %v2700_v38 = vmax.f32 %v2694_v32, 0.0 }
 0x1ad   :  { %v2697_v36 = vadd.f32 %v3672_v35, %v2656_v34 }
 0x1af   :  { %v2701_v39 = vmax.f32 %v2697_v36, 0.0 }
 0x1b1   :  { %v2702_v40 = vpack.c.bf16 %v2701_v39, %v2700_v38 }
 0x1b3   :  { %3713 = vmatmul.mubr.bf16.vlgmr.msra.gmra.mxu0 %v2702_v40 }
 0x273   :  { %v2808_v45 = vpop.f32.mrf.mxu0 }
 0x274   :  { %v2809_v47 = vadd.f32 %v3375_v44, %v2808_v45 }
 0x275   :  { %v3714_v46 = vpop.f32.mrf.mxu0 }
 0x276   :  { %v2815_v51 = vmax.f32 %v2809_v47, 0.0 }
 0x277   :  { %v2811_v48 = vpop.f32.mrf.mxu0 }
 0x278   :  { %v2812_v49 = vadd.f32 %v3375_v44, %v2811_v48 }
 0x279   :  { %v3715_v50 = vpop.f32.mrf.mxu0 }
 0x27a   :  { %v2816_v52 = vmax.f32 %v2812_v49, 0.0 }
 0x27c   :  { %v2817_v54 = vpack.c.bf16 %v2816_v52, %v2815_v51 }
 0x27e   :  { %3725 = vmatmul.mubr.msk.bf16.vlgmr.msra.gmra.mxu1 %vm2857_vm1, %v2817_v54 }
 0x27f   :  { %3729 = vmatpush3.bf16.msra.mxu1 %v4038_v53  ;;  %3744 = vmatprep.mubr.msk.bf16.mxu1 %vm4142_vm0, %v4141_v37 }
 0x280   :  { %3730 = vmatprep.subr.bf16.mxu1 %v4141_v37 }
 0x283   :  { %3731 = vmatpush3.bf16.msra.mxu1 %v4039_v55 }
 0x284   :  { %3732 = vmatprep.subr.bf16.mxu1 %v4141_v37 }
 0x287   :  { %3733 = vmatpush3.bf16.msra.mxu1 %v4040_v56 }
 0x288   :  { %3734 = vmatprep.subr.bf16.mxu1 %v4141_v37 }
 0x28b   :  { %3735 = vmatpush3.bf16.msra.mxu1 %v4041_v57 }
 0x28c   :  { %3736 = vmatprep.subr.bf16.mxu1 %v4141_v37 }
 0x28f   :  { %3737 = vmatpush3.bf16.msra.mxu1 %v4042_v58 }
 0x290   :  { %3738 = vmatprep.subr.bf16.mxu1 %v4141_v37 }
 0x293   :  { %3739 = vmatpush3.bf16.msra.mxu1 %v4043_v59 }
 0x294   :  { %3740 = vmatprep.subr.bf16.mxu1 %v4141_v37 }
 0x297   :  { %3741 = vmatpush3.bf16.msra.mxu1 %v4044_v60 }
 0x298   :  { %3742 = vmatprep.subr.bf16.mxu1 %v4141_v37 }
 0x29b   :  { %3743 = vmatpush3.bf16.msra.mxu1 %v4045_v61 }
 0x33e   :  { %v2895_v0 = vpop.f32.mrf.mxu1 }
 0x33f   :  { %v2896_v5 = vadd.f32 %v3384_v2, %v2895_v0 }
 0x340   :  { %v3726_v3 = vpop.f32.mrf.mxu1 }
 0x342   :  { %v2898_v4 = vpop.f32.mrf.mxu1 }
 0x343   :  { %v2899_v6 = vadd.f32 %v3384_v2, %v2898_v4 }
 0x344   :  { %v3727_v37 = vpop.f32.mrf.mxu1 }
 0x345   :  { %v2902_v8 = vpack.c.bf16 %v2899_v6, %v2896_v5  ;;  %v3399_v9 = vpack.c.bf16 %v2899_v6, %v2899_v6 }
 0x347   :  { %v3023_v10 = vrot.slane %v2902_v8, %v3022_v7  ;;  %v3030_v11 = vrot.slane %v3399_v9, %v3022_v7  ;;  %3745 = vmatmul.mubr.bf16.vlgmr.msra.gmra.mxu1 %v2902_v8 }
 0x349   :  { %v3031_v12 = vcombine.high %v3023_v10, %v3023_v10  ;;  %v3032_v13 = vcombine.high %v3030_v11, %v3030_v11  ;;  %v3039_v14 = vrot.slane %v3023_v10, %v3022_v7  ;;  %v3046_v15 = vrot.slane %v3030_v11, %v3022_v7  ;;  %3400 = vst.sshfl [vmem:[#allocation8] sm:$0x1 pattern:$0x73625140] %v3023_v10 }
 0x34a   :  { %3402 = vst.sshfl [vmem:[#allocation8 + $0x4] sm:$0x1 pattern:$0x73625140] %v3030_v11 }
 0x34b   :  { %v3053_v16 = vrot.slane %v3031_v12, %v3022_v7  ;;  %v3060_v17 = vrot.slane %v3032_v13, %v3022_v7  ;;  %v3061_v18 = vcombine.high %v3039_v14, %v3039_v14  ;;  %v3062_v19 = vcombine.high %v3046_v15, %v3046_v15  ;;  %3401 = vst.sshfl [vmem:[#allocation8 + $0x1] sm:$0x1 pattern:$0x73625140] %v3031_v12 }
 0x34c   :  { %3403 = vst.sshfl [vmem:[#allocation8 + $0x5] sm:$0x1 pattern:$0x73625140] %v3032_v13 }
 0x34d   :  { %v3063_v20 = vcombine.high %v3053_v16, %v3053_v16  ;;  %v3064_v33 = vcombine.high %v3060_v17, %v3060_v17  ;;  %3075 = vst [vmem:[#allocation8 + $0x2] sm:$0x1] %v3061_v18  ;;  %3079 = vst [vmem:[#allocation8 + $0x6] sm:$0x1] %v3062_v19 }
 0x34f   :  { %3076 = vst [vmem:[#allocation8 + $0x3] sm:$0x1] %v3063_v20  ;;  %3080 = vst [vmem:[#allocation8 + $0x7] sm:$0x1] %v3064_v33 }
 0x407   :  { %v3008_v21 = vpop.f32.mrf.mxu1 }
 0x408   :  { %v3009_v25 = vadd.f32 %v3390_v22, %v3008_v21 }
 0x409   :  { %v3746_v23 = vpop.f32.mrf.mxu1 }
 0x40b   :  { %v3011_v24 = vpop.f32.mrf.mxu1 }
 0x40c   :  { %v3012_v26 = vadd.f32 %v3390_v22, %v3011_v24 }
 0x40d   :  { %v3747_v27 = vpop.f32.mrf.mxu1 }
 0x40e   :  { %v3081_v28 = vpack.c.bf16 %v3012_v26, %v3009_v25  ;;  %v3404_v29 = vpack.c.bf16 %v3012_v26, %v3012_v26 }
 0x410   :  { %v3090_v30 = vrot.slane %v3081_v28, %v3022_v7  ;;  %v3097_v31 = vrot.slane %v3404_v29, %v3022_v7 }
 0x412   :  { %v3098_v32 = vcombine.high %v3090_v30, %v3090_v30  ;;  %v3099_v34 = vcombine.high %v3097_v31, %v3097_v31  ;;  %v3106_v35 = vrot.slane %v3090_v30, %v3022_v7  ;;  %v3113_v36 = vrot.slane %v3097_v31, %v3022_v7  ;;  %3405 = vst.sshfl [vmem:[#allocation7] sm:$0x1 pattern:$0x73625140] %v3090_v30 }
 0x413   :  { %3407 = vst.sshfl [vmem:[#allocation7 + $0x4] sm:$0x1 pattern:$0x73625140] %v3097_v31 }
 0x414   :  { %v3120_v38 = vrot.slane %v3098_v32, %v3022_v7  ;;  %v3127_v39 = vrot.slane %v3099_v34, %v3022_v7  ;;  %v3128_v40 = vcombine.high %v3106_v35, %v3106_v35  ;;  %v3129_v41 = vcombine.high %v3113_v36, %v3113_v36  ;;  %3406 = vst.sshfl [vmem:[#allocation7 + $0x1] sm:$0x1 pattern:$0x73625140] %v3098_v32 }
 0x415   :  { %3408 = vst.sshfl [vmem:[#allocation7 + $0x5] sm:$0x1 pattern:$0x73625140] %v3099_v34 }
 0x416   :  { %v3130_v42 = vcombine.high %v3120_v38, %v3120_v38  ;;  %v3131_v43 = vcombine.high %v3127_v39, %v3127_v39  ;;  %3142 = vst [vmem:[#allocation7 + $0x2] sm:$0x1] %v3128_v40  ;;  %3146 = vst [vmem:[#allocation7 + $0x6] sm:$0x1] %v3129_v41 }
 0x418   :  { %3143 = vst [vmem:[#allocation7 + $0x3] sm:$0x1] %v3130_v42  ;;  %3147 = vst [vmem:[#allocation7 + $0x7] sm:$0x1] %v3131_v43 }
 0x419   :  { %3152 = vsyncadd [#allocation4], 112  ;;  %s4144_s8 = smov [#allocation7]  }
 0x41a   :  { %s3153_s2 = sshll.u32 %s4144_s8, 4  ;;  %s3154_s2 = int_to_ptr.vmem [resolvable:$true] %s3153_s2 }
 0x41b   :  { %s4086_s25 = scalar_lea.vmem %s3154_s2, 16  ;;  %s4090_s26 = scalar_lea.vmem %s3154_s2, 128 }
 0x41c   :  { %p4087_p10 = scmp.ne.s32.totalorder %s3154_s2, %s4086_s25  ;;  %p4091_p11 = scmp.lt.s32.totalorder %s3154_s2, %s3154_s2 }
 0x41d   :  { %p4092_p12 = scmp.lt.s32.totalorder %s4090_s26, %s4086_s25 }
 0x41f   :  { %p4093_p13 = por %p4092_p12, %p4091_p11 }
 0x421   :  { %p4094_p0 = pnand %p4093_p13, %p4087_p10 }
 0x423   :  { %4097 = shalt.err (!%p4094_p0)
}
 0x424   :  { %s4145_s27 = smov 16   ;;  %s4146_s0 = smov 1  }
 0x425   :  { %3159 = dma.vmem_to_hbm [thread:$0]  %s3154_s2, 16, %s4376_s9, [#allocation4], %s4145_s27, %s4145_s27, %s4146_s0  }
 0x426   :  { %3164 = vsyncadd [#allocation9], 112  ;;  %s4147_s29 = smov [#allocation8]  }
 0x427   :  { %s3165_s30 = sshll.u32 %s4147_s29, 4  ;;  %s3166_s30 = int_to_ptr.vmem [resolvable:$true] %s3165_s30 }
 0x428   :  { %s4106_s11 = scalar_lea.vmem %s3166_s30, 16  ;;  %s4110_s5 = scalar_lea.vmem %s3166_s30, 128 }
 0x429   :  { %p4107_p1 = scmp.ne.s32.totalorder %s3166_s30, %s4106_s11  ;;  %p4111_p2 = scmp.lt.s32.totalorder %s3166_s30, %s3166_s30 }
 0x42a   :  { %p4112_p3 = scmp.lt.s32.totalorder %s4110_s5, %s4106_s11 }
 0x42c   :  { %p4113_p4 = por %p4112_p3, %p4111_p2 }
 0x42e   :  { %p4114_p5 = pnand %p4113_p4, %p4107_p1 }
 0x430   :  { %4117 = shalt.err (!%p4114_p5)
}
 0x431   :  { %3171 = dma.vmem_to_hbm [thread:$0]  %s3166_s30, 16, %s4377_s10, [#allocation9], %s4145_s27, %s4145_s27, %s4146_s0  }
 0x432   :  { %4130 = dma.done.wait [#allocation4], 128  }
 0x433   :  { %4131 = vsyncadd [#allocation4], 4294967168 }
 0x434   :  { %4132 = dma.done.wait [#allocation9], 128  }
 0x435   :  { %4133 = vsyncadd [#allocation9], 4294967168 }
 0x436   :  { %3178 = vsyncpa [#allocation3], 1 }
 0x437   :  { %3179 = vsyncpa [#allocation6], 1 }
 0x438   :  { %3180 = vsyncpa [#allocation4], 1 }
 0x439   :  { %3181 = vsyncpa [#allocation9], 1 }

</bundles_post_ra>
